<compile_context>
chip_gen: v7x
topology: tpu7x:2x2x1
jax: 0.10.0
libtpu: 0.0.40
codegen_flags: <defaults>
</compile_context>

<pallas_src>
import jax
import jax.numpy as jnp
from jax.experimental import pallas as pl
from jax.experimental.pallas import tpu as pltpu


def _round_up(n, m):
    return ((n + m - 1) // m) * m


def _actor_kernel(ma_ref, x_ref, w1_ref, b1_ref, w2_ref, b2_ref, w3_ref, b3_ref, o_ref):
    max_action = ma_ref[0, 0]                                   # f32 scalar from SMEM
    # layer 1: Linear(state_dim, 400) + ReLU   (bf16 inputs, f32 accumulate)
    h1 = jnp.dot(x_ref[...], w1_ref[...], preferred_element_type=jnp.float32)
    h1 = jnp.maximum(h1 + b1_ref[...], 0.0)
    # layer 2: Linear(400, 300) + ReLU
    h2 = jnp.dot(h1.astype(jnp.bfloat16), w2_ref[...], preferred_element_type=jnp.float32)
    h2 = jnp.maximum(h2 + b2_ref[...], 0.0)
    # layer 3: Linear(300, action_dim) -> max_action * tanh
    h3 = jnp.dot(h2.astype(jnp.bfloat16), w3_ref[...], preferred_element_type=jnp.float32)
    o_ref[...] = (max_action * jnp.tanh(h3 + b3_ref[...])).astype(o_ref.dtype)


def init_actor_params(key, state_dim, action_dim):
    """Deterministic init mirroring torch.nn.Linear's default
    U(-1/sqrt(fan_in), 1/sqrt(fan_in)). Weights stored [in, out], all f32."""
    dims = [(state_dim, 400), (400, 300), (300, action_dim)]
    params = []
    for fan_in, fan_out in dims:
        key, kw, kb = jax.random.split(key, 3)
        bound = 1.0 / jnp.sqrt(float(fan_in))
        w = jax.random.uniform(kw, (fan_in, fan_out), jnp.float32, -bound, bound)
        b = jax.random.uniform(kb, (1, fan_out), jnp.float32, -bound, bound)
        params.extend([w, b])
    return tuple(params)


def prepare_actor_params(params):
    """One-time weight prep: zero-pad OUTPUT dims to multiples of 128 lanes and cast
    weights to bf16 (biases stay f32). The K=24 contraction of layer 1 is left unpadded
    on purpose (see header). Do this once and reuse across calls."""
    w1, b1, w2, b2, w3, b3 = params
    state_dim = w1.shape[0]
    h1, h2, ad = w1.shape[1], w2.shape[1], w3.shape[1]
    h1p, h2p, ap = _round_up(h1, 128), _round_up(h2, 128), _round_up(ad, 128)

    def pad2(a, rows, cols):
        return jnp.pad(a, ((0, rows - a.shape[0]), (0, cols - a.shape[1])))

    w1p = pad2(w1, state_dim, h1p).astype(jnp.bfloat16)
    b1p = pad2(b1, 1, h1p)
    w2p = pad2(w2, h1p, h2p).astype(jnp.bfloat16)
    b2p = pad2(b2, 1, h2p)
    w3p = pad2(w3, h2p, ap).astype(jnp.bfloat16)
    b3p = pad2(b3, 1, ap)
    return (w1p, b1p, w2p, b2p, w3p, b3p)


def _device_kind():
    try:
        return jax.devices()[0].device_kind.lower()
    except Exception:
        return "unknown"


def _auto_tile_m(kind):
    # v5e (and older gens): slower MXU + tightest scoped-VMEM default -> 256.
    # v6e / v7x: per-step compute at tm=256 is below the ~0.35us fixed per-step
    # overhead, so use a larger tile (live set at tm=512 is only a few MiB).
    if any(tag in kind for tag in ("v2", "v3", "v4", "v5")):
        return 256
    return 512


def _select_tile(batch, tile_m, two_cores):
    """Return (tm, batch_p). tm is a multiple of 16 (bf16 sublane pack); on 2-TC
    chips (v7x) keep >=2 grid steps when the batch is large enough so both
    TensorCores get work via the 'parallel' grid axis."""
    if batch >= tile_m:
        tm = tile_m
        if two_cores and batch >= 512:
            tm = min(tm, max(256, ((batch // 2) // 256) * 256))
        return tm, _round_up(batch, tm)
    if two_cores and batch >= 256:
        batch_p = _round_up(batch, 32)
        return batch_p // 2, batch_p
    # small batch: pad rows to the bf16 sublane pack so every vld/vst is unmasked
    batch_p = _round_up(batch, 16)
    return batch_p, batch_p


def _build_call(tm, batch_p, state_dim, h1p, h2p, ap, single_buffer_weights):
    def resident(shape):
        # Constant index_map -> the block never changes across grid steps;
        # single-buffer it so the second VMEM buffer isn't wasted.
        if single_buffer_weights:
            return pl.BlockSpec(shape, lambda i: (0, 0), pipeline_mode=pl.Buffered(1))
        return pl.BlockSpec(shape, lambda i: (0, 0))

    return pl.pallas_call(
        _actor_kernel,
        out_shape=jax.ShapeDtypeStruct((batch_p, ap), jnp.float32),
        grid=(batch_p // tm,),
        in_specs=[
            pl.BlockSpec(memory_space=pltpu.MemorySpace.SMEM),   # max_action scalar
            pl.BlockSpec((tm, state_dim), lambda i: (i, 0)),     # x tile
            resident((state_dim, h1p)),                          # w1 (VMEM-resident)
            resident((1, h1p)),                                  # b1
            resident((h1p, h2p)),                                # w2 (VMEM-resident)
            resident((1, h2p)),                                  # b2
            resident((h2p, ap)),                                 # w3 (VMEM-resident)
            resident((1, ap)),                                   # b3
        ],
        out_specs=pl.BlockSpec((tm, ap), lambda i: (i, 0)),
        compiler_params=pltpu.CompilerParams(dimension_semantics=("parallel",)),
    )


def actor_forward(x, prepared_params, action_dim, max_action, *, tile_m=None):
    """Fused 3-layer MLP forward. tile_m=None auto-selects per chip generation."""
    w1, b1, w2, b2, w3, b3 = prepared_params
    batch, state_dim = x.shape
    h1p, h2p, ap = w1.shape[1], w2.shape[1], w3.shape[1]

    kind = _device_kind()
    if tile_m is None:
        tile_m = _auto_tile_m(kind)
    tm, batch_p = _select_tile(batch, tile_m, two_cores=("v7" in kind))

    xb = x.astype(jnp.bfloat16)
    if batch_p != batch:
        xb = jnp.pad(xb, ((0, batch_p - batch), (0, 0)))

    ma = jnp.full((1, 1), max_action, dtype=jnp.float32)
    args = (ma, xb, w1, b1, w2, b2, w3, b3)

    try:
        out = _build_call(tm, batch_p, state_dim, h1p, h2p, ap, True)(*args)
    except Exception:
        # Fallback for jax versions that reject single-buffered pipeline_mode.
        out = _build_call(tm, batch_p, state_dim, h1p, h2p, ap, False)(*args)

    # Strip batch / action padding.
    return out[:batch, :action_dim]


def actor_reference(x, params, max_action):
    w1, b1, w2, b2, w3, b3 = params
    h1 = jax.nn.relu(x @ w1 + b1)
    h2 = jax.nn.relu(h1 @ w2 + b2)
    return max_action * jnp.tanh(h2 @ w3 + b3)


if __name__ == "__main__":
    state_dim = 24
    action_dim = 4
    max_action = 2.0

    key = jax.random.PRNGKey(0)
    key_x, key_x2, key_p = jax.random.split(key, 3)
    params = init_actor_params(key_p, state_dim, action_dim)
    prepared = prepare_actor_params(params)  # one-time: pad + bf16-cast weights

    # --- small-batch inference path (single grid step, 16-row padded) ---
    batch = 8
    x = jax.random.normal(key_x, (batch, state_dim), jnp.float32)
    out = jax.block_until_ready(actor_forward(x, prepared, action_dim, max_action))
    ref = actor_reference(x, params, max_action)
    assert out.shape == (batch, action_dim)
    # bf16 weights/activations -> loose-but-tight-enough tolerance vs f32 reference.
    assert jnp.allclose(out, ref, atol=2e-2, rtol=2e-2), "small-batch mismatch vs reference"

    # --- training-size batch path (exercises batch tiling / padding / multi-step grid) ---
    batch2 = 600
    x2 = jax.random.normal(key_x2, (batch2, state_dim), jnp.float32)
    out2 = jax.block_until_ready(actor_forward(x2, prepared, action_dim, max_action))
    ref2 = actor_reference(x2, params, max_action)
    assert out2.shape == (batch2, action_dim)
    assert jnp.allclose(out2, ref2, atol=3e-2, rtol=3e-2), "batched mismatch vs reference"

    print("KERNEL_OK")
</pallas_src>

<mosaic_0001>
module attributes {stable_mosaic.version = 11 : i64} {
  func.func @_actor_kernel(%arg0: i32, %arg1: memref<1x1xf32, #tpu.memory_space<smem>>, %arg2: memref<16x24xbf16, #tpu.memory_space<vmem>>, %arg3: memref<24x512xbf16, #tpu.memory_space<vmem>>, %arg4: memref<1x512xf32, #tpu.memory_space<vmem>>, %arg5: memref<512x384xbf16, #tpu.memory_space<vmem>>, %arg6: memref<1x384xf32, #tpu.memory_space<vmem>>, %arg7: memref<384x128xbf16, #tpu.memory_space<vmem>>, %arg8: memref<1x128xf32, #tpu.memory_space<vmem>>, %arg9: memref<16x128xf32, #tpu.memory_space<vmem>>) attributes {dimension_semantics = [#tpu.dimension_semantics<parallel>], iteration_bounds = array<i64: 1>, scalar_prefetch = 0 : i64, scratch_operands = 0 : i64, tpu.core_type = #tpu.core_type<tc>, window_params = [{transform_indices = @transform_0, window_bounds = array<i64: 1, 1>}, {transform_indices = @transform_1, window_bounds = array<i64: 16, 24>}, {pipeline_mode = #tpu.pipeline_mode<synchronous>, transform_indices = @transform_2, window_bounds = array<i64: 24, 512>}, {pipeline_mode = #tpu.pipeline_mode<synchronous>, transform_indices = @transform_3, window_bounds = array<i64: 1, 512>}, {pipeline_mode = #tpu.pipeline_mode<synchronous>, transform_indices = @transform_4, window_bounds = array<i64: 512, 384>}, {pipeline_mode = #tpu.pipeline_mode<synchronous>, transform_indices = @transform_5, window_bounds = array<i64: 1, 384>}, {pipeline_mode = #tpu.pipeline_mode<synchronous>, transform_indices = @transform_6, window_bounds = array<i64: 384, 128>}, {pipeline_mode = #tpu.pipeline_mode<synchronous>, transform_indices = @transform_7, window_bounds = array<i64: 1, 128>}, {transform_indices = @transform_8, window_bounds = array<i64: 16, 128>}]} {
    %c0 = arith.constant 0 : index
    %c0_0 = arith.constant 0 : index
    %0 = memref.load %arg1[%c0, %c0_0] : memref<1x1xf32, #tpu.memory_space<smem>>
    %c0_1 = arith.constant 0 : index
    %c0_2 = arith.constant 0 : index
    %1 = vector.load %arg2[%c0_1, %c0_2] : memref<16x24xbf16, #tpu.memory_space<vmem>>, vector<16x24xbf16>
    %c0_3 = arith.constant 0 : index
    %c0_4 = arith.constant 0 : index
    %2 = vector.load %arg3[%c0_3, %c0_4] : memref<24x512xbf16, #tpu.memory_space<vmem>>, vector<24x512xbf16>
    %cst = arith.constant dense<0.000000e+00> : vector<16x512xf32>
    %3 = tpu.matmul %1, %2, %cst {dimension_numbers = #tpu.dot_dimension_numbers<[1], [0], [0], [1], [0, 0, 1, 1], [], []>} : vector<16x24xbf16>, vector<24x512xbf16>, vector<16x512xf32> -> vector<16x512xf32>
    %c0_5 = arith.constant 0 : index
    %c0_6 = arith.constant 0 : index
    %4 = vector.load %arg4[%c0_5, %c0_6] : memref<1x512xf32, #tpu.memory_space<vmem>>, vector<1x512xf32>
    %5 = vector.broadcast %4 : vector<1x512xf32> to vector<16x512xf32>
    %6 = arith.addf %3, %5 : vector<16x512xf32>
    %cst_7 = arith.constant 0.000000e+00 : f32
    %7 = vector.broadcast %cst_7 : f32 to vector<16x512xf32>
    %8 = arith.maximumf %6, %7 : vector<16x512xf32>
    %9 = arith.truncf %8 : vector<16x512xf32> to vector<16x512xbf16>
    %c0_8 = arith.constant 0 : index
    %c0_9 = arith.constant 0 : index
    %10 = vector.load %arg5[%c0_8, %c0_9] : memref<512x384xbf16, #tpu.memory_space<vmem>>, vector<512x384xbf16>
    %cst_10 = arith.constant dense<0.000000e+00> : vector<16x384xf32>
    %11 = tpu.matmul %9, %10, %cst_10 {dimension_numbers = #tpu.dot_dimension_numbers<[1], [0], [0], [1], [0, 0, 1, 1], [], []>} : vector<16x512xbf16>, vector<512x384xbf16>, vector<16x384xf32> -> vector<16x384xf32>
    %c0_11 = arith.constant 0 : index
    %c0_12 = arith.constant 0 : index
    %12 = vector.load %arg6[%c0_11, %c0_12] : memref<1x384xf32, #tpu.memory_space<vmem>>, vector<1x384xf32>
    %13 = vector.broadcast %12 : vector<1x384xf32> to vector<16x384xf32>
    %14 = arith.addf %11, %13 : vector<16x384xf32>
    %cst_13 = arith.constant 0.000000e+00 : f32
    %15 = vector.broadcast %cst_13 : f32 to vector<16x384xf32>
    %16 = arith.maximumf %14, %15 : vector<16x384xf32>
    %17 = arith.truncf %16 : vector<16x384xf32> to vector<16x384xbf16>
    %c0_14 = arith.constant 0 : index
    %c0_15 = arith.constant 0 : index
    %18 = vector.load %arg7[%c0_14, %c0_15] : memref<384x128xbf16, #tpu.memory_space<vmem>>, vector<384x128xbf16>
    %cst_16 = arith.constant dense<0.000000e+00> : vector<16x128xf32>
    %19 = tpu.matmul %17, %18, %cst_16 {dimension_numbers = #tpu.dot_dimension_numbers<[1], [0], [0], [1], [0, 0, 1, 1], [], []>} : vector<16x384xbf16>, vector<384x128xbf16>, vector<16x128xf32> -> vector<16x128xf32>
    %c0_17 = arith.constant 0 : index
    %c0_18 = arith.constant 0 : index
    %20 = vector.load %arg8[%c0_17, %c0_18] : memref<1x128xf32, #tpu.memory_space<vmem>>, vector<1x128xf32>
    %21 = vector.broadcast %20 : vector<1x128xf32> to vector<16x128xf32>
    %22 = arith.addf %19, %21 : vector<16x128xf32>
    %23 = math.tanh %22 : vector<16x128xf32>
    %24 = vector.broadcast %0 : f32 to vector<16x128xf32>
    %25 = arith.mulf %24, %23 : vector<16x128xf32>
    %c0_19 = arith.constant 0 : index
    %c0_20 = arith.constant 0 : index
    %26 = vector.load %arg9[%c0_19, %c0_20] : memref<16x128xf32, #tpu.memory_space<vmem>>, vector<16x128xf32>
    tpu.vector_store %arg9[%c0_19, %c0_20], %25 {strides = array<i32>} : memref<16x128xf32, #tpu.memory_space<vmem>>, vector<16x128xf32>,
    return
  }
  func.func @transform_0(%arg0: i32) -> (i32, i32) {
    %c0_i32 = arith.constant 0 : i32
    %c0_i32_0 = arith.constant 0 : i32
    %c0_i32_1 = arith.constant 0 : i32
    return %c0_i32, %c0_i32_0 : i32, i32
  }
  func.func @transform_1(%arg0: i32) -> (i32, i32) {
    %c0_i32 = arith.constant 0 : i32
    %c0_i32_0 = arith.constant 0 : i32
    return %arg0, %c0_i32 : i32, i32
  }
  func.func @transform_2(%arg0: i32) -> (i32, i32) {
    %c0_i32 = arith.constant 0 : i32
    %c0_i32_0 = arith.constant 0 : i32
    %c0_i32_1 = arith.constant 0 : i32
    return %c0_i32, %c0_i32_0 : i32, i32
  }
  func.func @transform_3(%arg0: i32) -> (i32, i32) {
    %c0_i32 = arith.constant 0 : i32
    %c0_i32_0 = arith.constant 0 : i32
    %c0_i32_1 = arith.constant 0 : i32
    return %c0_i32, %c0_i32_0 : i32, i32
  }
  func.func @transform_4(%arg0: i32) -> (i32, i32) {
    %c0_i32 = arith.constant 0 : i32
    %c0_i32_0 = arith.constant 0 : i32
    %c0_i32_1 = arith.constant 0 : i32
    return %c0_i32, %c0_i32_0 : i32, i32
  }
  func.func @transform_5(%arg0: i32) -> (i32, i32) {
    %c0_i32 = arith.constant 0 : i32
    %c0_i32_0 = arith.constant 0 : i32
    %c0_i32_1 = arith.constant 0 : i32
    return %c0_i32, %c0_i32_0 : i32, i32
  }
  func.func @transform_6(%arg0: i32) -> (i32, i32) {
    %c0_i32 = arith.constant 0 : i32
    %c0_i32_0 = arith.constant 0 : i32
    %c0_i32_1 = arith.constant 0 : i32
    return %c0_i32, %c0_i32_0 : i32, i32
  }
  func.func @transform_7(%arg0: i32) -> (i32, i32) {
    %c0_i32 = arith.constant 0 : i32
    %c0_i32_0 = arith.constant 0 : i32
    %c0_i32_1 = arith.constant 0 : i32
    return %c0_i32, %c0_i32_0 : i32, i32
  }
  func.func @transform_8(%arg0: i32) -> (i32, i32) {
    %c0_i32 = arith.constant 0 : i32
    %c0_i32_0 = arith.constant 0 : i32
    return %arg0, %c0_i32 : i32, i32
  }
}

module attributes {stable_mosaic.version = 11 : i64} {
  func.func @_actor_kernel(%arg0: i32, %arg1: memref<1x1xf32, #tpu.memory_space<smem>>, %arg2: memref<16x24xbf16, #tpu.memory_space<vmem>>, %arg3: memref<24x512xbf16, #tpu.memory_space<vmem>>, %arg4: memref<1x512xf32, #tpu.memory_space<vmem>>, %arg5: memref<512x384xbf16, #tpu.memory_space<vmem>>, %arg6: memref<1x384xf32, #tpu.memory_space<vmem>>, %arg7: memref<384x128xbf16, #tpu.memory_space<vmem>>, %arg8: memref<1x128xf32, #tpu.memory_space<vmem>>, %arg9: memref<16x128xf32, #tpu.memory_space<vmem>>) attributes {dimension_semantics = [#tpu.dimension_semantics<parallel>], iteration_bounds = array<i64: 1>, scalar_prefetch = 0 : i64, scratch_operands = 0 : i64, tpu.core_type = #tpu.core_type<tc>, window_params = [{transform_indices = @transform_0, window_bounds = array<i64: 1, 1>}, {transform_indices = @transform_1, window_bounds = array<i64: 16, 24>}, {pipeline_mode = #tpu.pipeline_mode<synchronous>, transform_indices = @transform_2, window_bounds = array<i64: 24, 512>}, {pipeline_mode = #tpu.pipeline_mode<synchronous>, transform_indices = @transform_3, window_bounds = array<i64: 1, 512>}, {pipeline_mode = #tpu.pipeline_mode<synchronous>, transform_indices = @transform_4, window_bounds = array<i64: 512, 384>}, {pipeline_mode = #tpu.pipeline_mode<synchronous>, transform_indices = @transform_5, window_bounds = array<i64: 1, 384>}, {pipeline_mode = #tpu.pipeline_mode<synchronous>, transform_indices = @transform_6, window_bounds = array<i64: 384, 128>}, {pipeline_mode = #tpu.pipeline_mode<synchronous>, transform_indices = @transform_7, window_bounds = array<i64: 1, 128>}, {transform_indices = @transform_8, window_bounds = array<i64: 16, 128>}]} {
    %c0 = arith.constant 0 : index
    %c0_0 = arith.constant 0 : index
    %0 = memref.load %arg1[%c0, %c0_0] : memref<1x1xf32, #tpu.memory_space<smem>>
    %c0_1 = arith.constant 0 : index
    %c0_2 = arith.constant 0 : index
    %1 = vector.load %arg2[%c0_1, %c0_2] : memref<16x24xbf16, #tpu.memory_space<vmem>>, vector<16x24xbf16>
    %c0_3 = arith.constant 0 : index
    %c0_4 = arith.constant 0 : index
    %2 = vector.load %arg3[%c0_3, %c0_4] : memref<24x512xbf16, #tpu.memory_space<vmem>>, vector<24x512xbf16>
    %cst = arith.constant dense<0.000000e+00> : vector<16x512xf32>
    %3 = tpu.matmul %1, %2, %cst {dimension_numbers = #tpu.dot_dimension_numbers<[1], [0], [0], [1], [0, 0, 1, 1], [], []>} : vector<16x24xbf16>, vector<24x512xbf16>, vector<16x512xf32> -> vector<16x512xf32>
    %c0_5 = arith.constant 0 : index
    %c0_6 = arith.constant 0 : index
    %4 = vector.load %arg4[%c0_5, %c0_6] : memref<1x512xf32, #tpu.memory_space<vmem>>, vector<1x512xf32>
    %5 = vector.broadcast %4 : vector<1x512xf32> to vector<16x512xf32>
    %6 = arith.addf %3, %5 : vector<16x512xf32>
    %cst_7 = arith.constant 0.000000e+00 : f32
    %7 = vector.broadcast %cst_7 : f32 to vector<16x512xf32>
    %8 = arith.maximumf %6, %7 : vector<16x512xf32>
    %9 = arith.truncf %8 : vector<16x512xf32> to vector<16x512xbf16>
    %c0_8 = arith.constant 0 : index
    %c0_9 = arith.constant 0 : index
    %10 = vector.load %arg5[%c0_8, %c0_9] : memref<512x384xbf16, #tpu.memory_space<vmem>>, vector<512x384xbf16>
    %cst_10 = arith.constant dense<0.000000e+00> : vector<16x384xf32>
    %11 = tpu.matmul %9, %10, %cst_10 {dimension_numbers = #tpu.dot_dimension_numbers<[1], [0], [0], [1], [0, 0, 1, 1], [], []>} : vector<16x512xbf16>, vector<512x384xbf16>, vector<16x384xf32> -> vector<16x384xf32>
    %c0_11 = arith.constant 0 : index
    %c0_12 = arith.constant 0 : index
    %12 = vector.load %arg6[%c0_11, %c0_12] : memref<1x384xf32, #tpu.memory_space<vmem>>, vector<1x384xf32>
    %13 = vector.broadcast %12 : vector<1x384xf32> to vector<16x384xf32>
    %14 = arith.addf %11, %13 : vector<16x384xf32>
    %cst_13 = arith.constant 0.000000e+00 : f32
    %15 = vector.broadcast %cst_13 : f32 to vector<16x384xf32>
    %16 = arith.maximumf %14, %15 : vector<16x384xf32>
    %17 = arith.truncf %16 : vector<16x384xf32> to vector<16x384xbf16>
    %c0_14 = arith.constant 0 : index
    %c0_15 = arith.constant 0 : index
    %18 = vector.load %arg7[%c0_14, %c0_15] : memref<384x128xbf16, #tpu.memory_space<vmem>>, vector<384x128xbf16>
    %cst_16 = arith.constant dense<0.000000e+00> : vector<16x128xf32>
    %19 = tpu.matmul %17, %18, %cst_16 {dimension_numbers = #tpu.dot_dimension_numbers<[1], [0], [0], [1], [0, 0, 1, 1], [], []>} : vector<16x384xbf16>, vector<384x128xbf16>, vector<16x128xf32> -> vector<16x128xf32>
    %c0_17 = arith.constant 0 : index
    %c0_18 = arith.constant 0 : index
    %20 = vector.load %arg8[%c0_17, %c0_18] : memref<1x128xf32, #tpu.memory_space<vmem>>, vector<1x128xf32>
    %21 = vector.broadcast %20 : vector<1x128xf32> to vector<16x128xf32>
    %22 = arith.addf %19, %21 : vector<16x128xf32>
    %23 = math.tanh %22 : vector<16x128xf32>
    %24 = vector.broadcast %0 : f32 to vector<16x128xf32>
    %25 = arith.mulf %24, %23 : vector<16x128xf32>
    %c0_19 = arith.constant 0 : index
    %c0_20 = arith.constant 0 : index
    %26 = vector.load %arg9[%c0_19, %c0_20] : memref<16x128xf32, #tpu.memory_space<vmem>>, vector<16x128xf32>
    tpu.vector_store %arg9[%c0_19, %c0_20], %25 {strides = array<i32>} : memref<16x128xf32, #tpu.memory_space<vmem>>, vector<16x128xf32>,
    return
  }
  func.func @transform_0(%arg0: i32) -> (i32, i32) {
    %c0_i32 = arith.constant 0 : i32
    %c0_i32_0 = arith.constant 0 : i32
    %c0_i32_1 = arith.constant 0 : i32
    return %c0_i32, %c0_i32_0 : i32, i32
  }
  func.func @transform_1(%arg0: i32) -> (i32, i32) {
    %c0_i32 = arith.constant 0 : i32
    %c0_i32_0 = arith.constant 0 : i32
    return %arg0, %c0_i32 : i32, i32
  }
  func.func @transform_2(%arg0: i32) -> (i32, i32) {
    %c0_i32 = arith.constant 0 : i32
    %c0_i32_0 = arith.constant 0 : i32
    %c0_i32_1 = arith.constant 0 : i32
    return %c0_i32, %c0_i32_0 : i32, i32
  }
  func.func @transform_3(%arg0: i32) -> (i32, i32) {
    %c0_i32 = arith.constant 0 : i32
    %c0_i32_0 = arith.constant 0 : i32
    %c0_i32_1 = arith.constant 0 : i32
    return %c0_i32, %c0_i32_0 : i32, i32
  }
  func.func @transform_4(%arg0: i32) -> (i32, i32) {
    %c0_i32 = arith.constant 0 : i32
    %c0_i32_0 = arith.constant 0 : i32
    %c0_i32_1 = arith.constant 0 : i32
    return %c0_i32, %c0_i32_0 : i32, i32
  }
  func.func @transform_5(%arg0: i32) -> (i32, i32) {
    %c0_i32 = arith.constant 0 : i32
    %c0_i32_0 = arith.constant 0 : i32
    %c0_i32_1 = arith.constant 0 : i32
    return %c0_i32, %c0_i32_0 : i32, i32
  }
  func.func @transform_6(%arg0: i32) -> (i32, i32) {
    %c0_i32 = arith.constant 0 : i32
    %c0_i32_0 = arith.constant 0 : i32
    %c0_i32_1 = arith.constant 0 : i32
    return %c0_i32, %c0_i32_0 : i32, i32
  }
  func.func @transform_7(%arg0: i32) -> (i32, i32) {
    %c0_i32 = arith.constant 0 : i32
    %c0_i32_0 = arith.constant 0 : i32
    %c0_i32_1 = arith.constant 0 : i32
    return %c0_i32, %c0_i32_0 : i32, i32
  }
  func.func @transform_8(%arg0: i32) -> (i32, i32) {
    %c0_i32 = arith.constant 0 : i32
    %c0_i32_0 = arith.constant 0 : i32
    return %arg0, %c0_i32 : i32, i32
  }
}

</mosaic_0001>

<bundles_post_ra>
// kernel: tpu_custom_call.1
= control target key start
LH: loop header
LB: loop body
LE: loop exit
PB: predicated region body
PF: predicated region fallthrough
CT: control target
= control target key end

     0   :  { %14 = vsyncpa [#allocation4], 0  ;;  %s2121_s0 = inlined_call_operand.<no memory space> [shape: f32[1,1], index: 0, kind: input, shape index: {}]   ;;  %s2122_s1 = inlined_call_operand.hbm [shape: bf16[16,24], index: 1, kind: input, shape index: {}]   ;;  %s2123_s2 = inlined_call_operand.hbm [shape: bf16[24,512], index: 2, kind: input, shape index: {}]   ;;  %s2124_s3 = inlined_call_operand.vmem [shape: f32[1,512], index: 3, kind: input, shape index: {}]   ;;  %s2125_s4 = inlined_call_operand.hbm [shape: bf16[512,384], index: 4, kind: input, shape index: {}]   ;;  %s2126_s5 = inlined_call_operand.vmem [shape: f32[1,384], index: 5, kind: input, shape index: {}]   ;;  %s2127_s6 = inlined_call_operand.hbm [shape: bf16[384,128], index: 6, kind: input, shape index: {}]   ;;  %s2128_s7 = inlined_call_operand.vmem [shape: f32[1,128], index: 7, kind: input, shape index: {}]   ;;  %s2129_s8 = inlined_call_operand.hbm [shape: f32[16,128], index: 8, kind: output, shape index: {}]  }
   0x1   :  { %15 = vsyncpa [#allocation7], 0 }
   0x2   :  { %16 = vsyncpa [#allocation10], 0 }
   0x3   :  { %17 = vsyncpa [#allocation5], 0  ;;  %s1947_s27 = smov [#allocation6]   ;;  %s1829_s9 = scalar_lea.hbm %s2123_s2, 768 }
   0x4   :  { %s37_s28 = sshll.u32 %s1947_s27, 4  ;;  %p1830_p0 = scmp.ne.s32.totalorder %s2123_s2, %s1829_s9  ;;  %s38_s28 = int_to_ptr.vmem [resolvable:$true] %s37_s28 }
   0x5   :  { %p1833_p1 = scmp.lt.u32.totalorder %s1829_s9, %s2123_s2 }
   0x7   :  { %p1835_p2 = pnand %p1833_p1, %p1830_p0 }
   0x9   :  { %1838 = shalt.err (!%p1835_p2)
}
   0xa   :  { %s1839_s14 = scalar_lea.vmem %s38_s28, 768  ;;  %p1844_p4 = scmp.lt.s32.totalorder %s38_s28, %s38_s28 }
   0xb   :  { %p1840_p3 = scmp.ne.s32.totalorder %s38_s28, %s1839_s14  ;;  %p1845_p5 = scmp.lt.s32.totalorder %s1839_s14, %s1839_s14 }
   0xd   :  { %p1846_p6 = por %p1845_p5, %p1844_p4 }
   0xf   :  { %p1847_p7 = pnand %p1846_p6, %p1840_p3 }
  0x11   :  { %1850 = shalt.err (!%p1847_p7)
}
  0x12   :  { %s1948_s15 = smov 256   ;;  %s1949_s16 = smov 16  }
  0x13   :  { %43 = dma.hbm_to_vmem [thread:$0]  %s2123_s2, 768, %s38_s28, [#allocation7], %s1948_s15, %s1948_s15, %s1949_s16  }
  0x14   :  { %s1950_s19 = smov [#allocation3]   ;;  %s1851_s23 = scalar_lea.hbm %s2122_s1, 128 }
  0x15   :  { %s25_s20 = sshll.u32 %s1950_s19, 4  ;;  %p1852_p8 = scmp.ne.s32.totalorder %s2122_s1, %s1851_s23  ;;  %s26_s20 = int_to_ptr.vmem [resolvable:$true] %s25_s20 }
  0x16   :  { %p1855_p9 = scmp.lt.u32.totalorder %s1851_s23, %s2122_s1 }
  0x18   :  { %p1857_p10 = pnand %p1855_p9, %p1852_p8 }
  0x1a   :  { %1860 = shalt.err (!%p1857_p10)
}
  0x1b   :  { %s1861_s29 = scalar_lea.vmem %s26_s20, 128  ;;  %p1866_p12 = scmp.lt.s32.totalorder %s26_s20, %s26_s20 }
  0x1c   :  { %p1862_p11 = scmp.ne.s32.totalorder %s26_s20, %s1861_s29  ;;  %p1867_p13 = scmp.lt.s32.totalorder %s1861_s29, %s1861_s29 }
  0x1e   :  { %p1868_p0 = por %p1867_p13, %p1866_p12 }
  0x20   :  { %p1869_p1 = pnand %p1868_p0, %p1862_p11 }
  0x22   :  { %1872 = shalt.err (!%p1869_p1)
}
  0x23   :  { %s1951_s2 = smov 64   ;;  %s1952_s28 = smov 4  }
  0x24   :  { %31 = dma.hbm_to_vmem [thread:$0]  %s2122_s1, 128, %s26_s20, [#allocation4], %s1951_s2, %s1951_s2, %s1952_s28  }
  0x25   :  { %s1953_s10 = smov [#allocation8]   ;;  %s1873_s14 = scalar_lea.hbm %s2125_s4, 12288 }
  0x26   :  { %s51_s11 = sshll.u32 %s1953_s10, 4  ;;  %p1874_p2 = scmp.ne.s32.totalorder %s2125_s4, %s1873_s14  ;;  %s52_s11 = int_to_ptr.vmem [resolvable:$true] %s51_s11 }
  0x27   :  { %p1877_p3 = scmp.lt.u32.totalorder %s1873_s14, %s2125_s4 }
  0x29   :  { %p1879_p4 = pnand %p1877_p3, %p1874_p2 }
  0x2b   :  { %1882 = shalt.err (!%p1879_p4)
}
  0x2c   :  { %s1883_s19 = scalar_lea.vmem %s52_s11, 12288  ;;  %p1888_p6 = scmp.lt.s32.totalorder %s52_s11, %s52_s11 }
  0x2d   :  { %p1884_p5 = scmp.ne.s32.totalorder %s52_s11, %s1883_s19  ;;  %p1889_p7 = scmp.lt.s32.totalorder %s1883_s19, %s1883_s19 }
  0x2f   :  { %p1890_p8 = por %p1889_p7, %p1888_p6 }
  0x31   :  { %p1891_p9 = pnand %p1890_p8, %p1884_p5 }
  0x33   :  { %1894 = shalt.err (!%p1891_p9)
}
  0x34   :  { %s1954_s1 = smov 192   ;;  %s1955_s20 = smov 12  }
  0x35   :  { %57 = dma.hbm_to_vmem [thread:$0]  %s2125_s4, 12288, %s52_s11, [#allocation7], %s1954_s1, %s1954_s1, %s1955_s20  }
  0x36   :  { %s1956_s23 = smov [#allocation9]   ;;  %s1895_s27 = scalar_lea.hbm %s2127_s6, 3072 }
  0x37   :  { %s65_s24 = sshll.u32 %s1956_s23, 4  ;;  %p1896_p10 = scmp.ne.s32.totalorder %s2127_s6, %s1895_s27  ;;  %s66_s24 = int_to_ptr.vmem [resolvable:$true] %s65_s24 }
  0x38   :  { %p1899_p11 = scmp.lt.u32.totalorder %s1895_s27, %s2127_s6 }
  0x3a   :  { %p1901_p12 = pnand %p1899_p11, %p1896_p10 }
  0x3c   :  { %1904 = shalt.err (!%p1901_p12)
}
  0x3d   :  { %s1905_s12 = scalar_lea.vmem %s66_s24, 3072  ;;  %p1910_p0 = scmp.lt.s32.totalorder %s66_s24, %s66_s24 }
  0x3e   :  { %p1906_p13 = scmp.ne.s32.totalorder %s66_s24, %s1905_s12  ;;  %p1911_p1 = scmp.lt.s32.totalorder %s1905_s12, %s1905_s12 }
  0x40   :  { %p1912_p2 = por %p1911_p1, %p1910_p0 }
  0x42   :  { %p1913_p3 = pnand %p1912_p2, %p1906_p13 }
  0x44   :  { %1916 = shalt.err (!%p1913_p3)
}
  0x45   :  { %71 = dma.hbm_to_vmem [thread:$0]  %s2127_s6, 3072, %s66_s24, [#allocation10], %s1951_s2, %s1951_s2, %s1952_s28  }
  0x46   :  { %1939 = dma.done.wait [#allocation4], 128  }
  0x47   :  { %1940 = vsyncadd [#allocation4], 4294967168 }
  0x48   :  { %1941 = dma.done.wait [#allocation7], 13056  }
  0x49   :  { %1942 = vsyncadd [#allocation7], 4294954240 }
  0x4a   :  { %1943 = dma.done.wait [#allocation10], 3072  }
  0x4b   :  { %1944 = vsyncadd [#allocation10], 4294964224  ;;  %v1957_v0 = vmov 0   ;;  %v1662_v1 = vld [vmem:[#allocation6 + $0x4] ss:$16 sps:$4 sm:$0xff]   ;;  %vm157_vm0 = vcmask 1043456  }
  0x4c   :  { %202 = vmatprep.mubr.bf16.mxu0 %v1957_v0  ;;  %245 = vmatprep.mubr.bf16.mxu1 %v1957_v0  ;;  %v1664_v2 = vld [vmem:[#allocation6] ss:$16 sps:$4 sm:$0xff]   ;;  %v1668_v6 = vld [vmem:[#allocation6 + $0xc] ss:$16 sps:$4 sm:$0xff]   ;;  %v1670_v7 = vld [vmem:[#allocation6 + $0x8] ss:$16 sps:$4 sm:$0xff]   ;;  %v98_v0 = vlaneseq }
  0x4d   :  { %v94_v3 = vld [vmem:[#allocation6 + $0x20] sm:$0xff]  ;;  %170 = vmatprep.subr.bf16.mxu0 %v1662_v1  ;;  %v95_v9 = vld [vmem:[#allocation6 + $0x28] sm:$0xff]  ;;  %213 = vmatprep.subr.bf16.mxu1 %v1668_v6  ;;  %v1667_v13 = vld [vmem:[#allocation3] sm:$0xff]   ;;  %vm153_vm1 = vcmask 195584   ;;  %vm1959_vm2 = vmmov 0   ;;  %s1960_s16 = smov [#allocation11]  }
  0x4e   :  { %v1415_v4 = vcombine.high %v94_v3, %v94_v3  ;;  %v1414_v5 = vcombine.low %v94_v3, %v94_v3  ;;  %171 = vmatpush1.bf16.msra.mxu0 %v1664_v2  ;;  %v1417_v10 = vcombine.high %v95_v9, %v95_v9  ;;  %v1416_v11 = vcombine.low %v95_v9, %v95_v9  ;;  %v1675_v12 = vld [vmem:[#allocation8 + $0x4] ss:$12 sps:$4 sm:$0xff]   ;;  %v1673_v15 = vld [vmem:[#allocation8] ss:$12 sps:$4 sm:$0xff]   ;;  %v1678_v16 = vld [vmem:[#allocation8 + $0x1c] ss:$12 sps:$4 sm:$0xff]  }
  0x4f   :  { %214 = vmatpush1.bf16.msra.mxu1 %v1670_v7  ;;  %v1676_v17 = vld [vmem:[#allocation8 + $0x18] ss:$12 sps:$4 sm:$0xff]   ;;  %v1681_v18 = vld [vmem:[#allocation8 + $0x34] ss:$12 sps:$4 sm:$0xff]   ;;  %v1679_v19 = vld [vmem:[#allocation8 + $0x30] ss:$12 sps:$4 sm:$0xff]  }
  0x50   :  { %1418 = vmatprep.subr.msk.bf16.mxu0 %vm157_vm0, %v1415_v4  ;;  %v159_v8 = vsel %vm157_vm0, %v1414_v5, 0  ;;  %1420 = vmatprep.subr.msk.bf16.mxu1 %vm157_vm0, %v1417_v10  ;;  %v165_v14 = vsel %vm157_vm0, %v1416_v11, 0  ;;  %v1684_v20 = vld [vmem:[#allocation8 + $0x4c] ss:$12 sps:$4 sm:$0xff]   ;;  %v1700_v21 = vld [vmem:[#allocation8 + $0xc8] ss:$12 sps:$4 sm:$0xff]  }
  0x51   :  { %v1701_v22 = vld [vmem:[#allocation8 + $0x8] ss:$12 sps:$4 sm:$0xff]   ;;  %v1687_v24 = vld [vmem:[#allocation8 + $0x64] ss:$12 sps:$4 sm:$0xff]   ;;  %v1705_v25 = vld [vmem:[#allocation8 + $0xe0] ss:$12 sps:$4 sm:$0xff]  }
  0x52   :  { %173 = vmatpush1.bf16.msra.mxu0 %v159_v8  ;;  %v1682_v23 = vld [vmem:[#allocation8 + $0x48] ss:$12 sps:$4 sm:$0xff]   ;;  %v1706_v26 = vld [vmem:[#allocation8 + $0x20] ss:$12 sps:$4 sm:$0xff]   ;;  %v1710_v29 = vld [vmem:[#allocation8 + $0xf8] ss:$12 sps:$4 sm:$0xff]  }
  0x53   :  { %925 = vmatprep.subr.bf16.mxu0 %v1675_v12  ;;  %216 = vmatpush1.bf16.msra.mxu1 %v165_v14  ;;  %v1685_v27 = vld [vmem:[#allocation8 + $0x60] ss:$12 sps:$4 sm:$0xff]   ;;  %v1690_v28 = vld [vmem:[#allocation8 + $0x7c] ss:$12 sps:$4 sm:$0xff]   ;;  %v1711_v30 = vld [vmem:[#allocation8 + $0x38] ss:$12 sps:$4 sm:$0xff]  }
  0x54   :  { %1543 = vmatprep.subr.bf16.mxu1 %v1700_v21  ;;  %v1688_v31 = vld [vmem:[#allocation8 + $0x78] ss:$12 sps:$4 sm:$0xff]   ;;  %v1693_v32 = vld [vmem:[#allocation8 + $0x94] ss:$12 sps:$4 sm:$0xff]   ;;  %v1715_v33 = vld [vmem:[#allocation8 + $0x110] ss:$12 sps:$4 sm:$0xff]  }
  0x55   :  { %1419 = vmatmul.mubr.msk.bf16.vlgmr.msra.gmra.mrb[0].mxu0 %vm153_vm1, %v1667_v13  ;;  %v1716_v34 = vld [vmem:[#allocation8 + $0x50] ss:$12 sps:$4 sm:$0xff]   ;;  %v1720_v35 = vld [vmem:[#allocation8 + $0x128] ss:$12 sps:$4 sm:$0xff]   ;;  %v1696_v37 = vld [vmem:[#allocation8 + $0xac] ss:$12 sps:$4 sm:$0xff]  }
  0x56   :  { %926 = vmatpush1.bf16.msra.mxu0 %v1673_v15  ;;  %1421 = vmatmul.mubr.msk.bf16.vlgmr.msra.gmra.mrb[0].mxu1 %vm153_vm1, %v1667_v13  ;;  %v1691_v36 = vld [vmem:[#allocation8 + $0x90] ss:$12 sps:$4 sm:$0xff]   ;;  %v1721_v38 = vld [vmem:[#allocation8 + $0x68] ss:$12 sps:$4 sm:$0xff]   ;;  %v1725_v40 = vld [vmem:[#allocation8 + $0x140] ss:$12 sps:$4 sm:$0xff]  }
  0x57   :  { %927 = vmatprep.subr.bf16.mxu0 %v1678_v16  ;;  %1544 = vmatpush3.bf16.msra.mxu1 %v1701_v22  ;;  %v1694_v39 = vld [vmem:[#allocation8 + $0xa8] ss:$12 sps:$4 sm:$0xff]   ;;  %v1699_v41 = vld [vmem:[#allocation8 + $0xc4] ss:$12 sps:$4 sm:$0xff]   ;;  %v1726_v42 = vld [vmem:[#allocation8 + $0x80] ss:$12 sps:$4 sm:$0xff]  }
  0x58   :  { %1545 = vmatprep.subr.bf16.mxu1 %v1705_v25  ;;  %v1697_v43 = vld [vmem:[#allocation8 + $0xc0] ss:$12 sps:$4 sm:$0xff]   ;;  %v1704_v44 = vld [vmem:[#allocation8 + $0xdc] ss:$12 sps:$4 sm:$0xff]   ;;  %v1702_v45 = vld [vmem:[#allocation8 + $0xd8] ss:$12 sps:$4 sm:$0xff]  }
  0x59   :  { %v1709_v46 = vld [vmem:[#allocation8 + $0xf4] ss:$12 sps:$4 sm:$0xff]   ;;  %v1707_v47 = vld [vmem:[#allocation8 + $0xf0] ss:$12 sps:$4 sm:$0xff]   ;;  %v1714_v48 = vld [vmem:[#allocation8 + $0x10c] ss:$12 sps:$4 sm:$0xff]  }
  0x5a   :  { %928 = vmatpush1.bf16.msra.mxu0 %v1676_v17  ;;  %v1712_v49 = vld [vmem:[#allocation8 + $0x108] ss:$12 sps:$4 sm:$0xff]   ;;  %v1719_v50 = vld [vmem:[#allocation8 + $0x124] ss:$12 sps:$4 sm:$0xff]   ;;  %v1717_v51 = vld [vmem:[#allocation8 + $0x120] ss:$12 sps:$4 sm:$0xff]  }
  0x5b   :  { %929 = vmatprep.subr.bf16.mxu0 %v1681_v18  ;;  %1546 = vmatpush3.bf16.msra.mxu1 %v1706_v26  ;;  %v1724_v52 = vld [vmem:[#allocation8 + $0x13c] ss:$12 sps:$4 sm:$0xff]   ;;  %v1722_v53 = vld [vmem:[#allocation8 + $0x138] ss:$12 sps:$4 sm:$0xff]   ;;  %v1729_v54 = vld [vmem:[#allocation8 + $0x154] ss:$12 sps:$4 sm:$0xff]  }
  0x5c   :  { %1547 = vmatprep.subr.bf16.mxu1 %v1710_v29  ;;  %v1730_v55 = vld [vmem:[#allocation8 + $0x158] ss:$12 sps:$4 sm:$0xff]   ;;  %v1727_v56 = vld [vmem:[#allocation8 + $0x150] ss:$12 sps:$4 sm:$0xff]   ;;  %v1732_v60 = vld [vmem:[#allocation8 + $0x168] ss:$12 sps:$4 sm:$0xff]  }
  0x5d   :  { %v1731_v57 = vld [vmem:[#allocation8 + $0x98] ss:$12 sps:$4 sm:$0xff]   ;;  %v1735_v59 = vld [vmem:[#allocation8 + $0x170] ss:$12 sps:$4 sm:$0xff]   ;;  %v1740_v63 = vld [vmem:[#allocation8 + $0x248] ss:$12 sps:$4 sm:$0xff]  }
  0x5e   :  { %930 = vmatpush1.bf16.msra.mxu0 %v1679_v19  ;;  %v1734_v58 = vld [vmem:[#allocation8 + $0x16c] ss:$12 sps:$4 sm:$0xff]   ;;  %v1736_v61 = vld [vmem:[#allocation8 + $0xb0] ss:$12 sps:$4 sm:$0xff]   ;;  %v2066_v1 = vshrl.u32 %v98_v0, 7  ;;  %s1395_s17 = sshll.u32 %s1960_s16, 4  ;;  %s1396_s17 = int_to_ptr.vmem [resolvable:$true] %s1395_s17 }
  0x5f   :  { %931 = vmatprep.subr.bf16.mxu0 %v1684_v20  ;;  %1548 = vmatpush3.bf16.msra.mxu1 %v1711_v30  ;;  %v1739_v62 = vld [vmem:[#allocation8 + $0x184] ss:$12 sps:$4 sm:$0xff]   ;;  %v96_v3 = vld [vmem:[%s2124_s3] sm:$0xf]  ;;  %p1922_p5 = scmp.lt.s32.totalorder %s1396_s17, %s1396_s17 }
  0x60   :  { %1549 = vmatprep.subr.bf16.mxu1 %v1715_v33  ;;  %v100_v2 = vsub.s32 0, %v2066_v1  ;;  %v104_v4 = vsub.s32 1, %v2066_v1  ;;  %v108_v5 = vsub.s32 2, %v2066_v1  ;;  %v112_v7 = vsub.s32 3, %v2066_v1  ;;  %v1771_v0 = vld [vmem:[#allocation8 + $0x218] ss:$12 sps:$4 sm:$0xff]  }
  0x61   :  { %v1818_v1 = vld [vmem:[#allocation9 + $0x88] sm:$0xff]  }
  0x62   :  { %932 = vmatpush1.bf16.msra.mxu0 %v1682_v23  ;;  %v101_v6 = vrot.slane %v96_v3, %v100_v2  ;;  %v105_v8 = vrot.slane %v96_v3, %v104_v4  ;;  %v109_v10 = vrot.slane %v96_v3, %v108_v5  ;;  %v113_v13 = vrot.slane %v96_v3, %v112_v7  ;;  %v1774_v3 = vld [vmem:[#allocation8 + $0x22c] ss:$12 sps:$4 sm:$0xff]   ;;  %v1772_v7 = vld [vmem:[#allocation8 + $0x228] ss:$12 sps:$4 sm:$0xff]  }
  0x63   :  { %933 = vmatprep.subr.bf16.mxu0 %v1687_v24  ;;  %1550 = vmatpush3.bf16.msra.mxu1 %v1716_v34 }
  0x64   :  { %1551 = vmatprep.subr.bf16.mxu1 %v1720_v35  ;;  %v1737_v35 = vld [vmem:[#allocation8 + $0x180] ss:$12 sps:$4 sm:$0xff]  }
  0x66   :  { %934 = vmatpush1.bf16.msra.mxu0 %v1685_v27 }
  0x67   :  { %935 = vmatprep.subr.bf16.mxu0 %v1690_v28  ;;  %1552 = vmatpush3.bf16.msra.mxu1 %v1721_v38  ;;  %v1744_v38 = vld [vmem:[#allocation8 + $0x19c] ss:$12 sps:$4 sm:$0xff]  }
  0x68   :  { %1553 = vmatprep.subr.bf16.mxu1 %v1725_v40 }
  0x6a   :  { %936 = vmatpush1.bf16.msra.mxu0 %v1688_v31 }
  0x6b   :  { %937 = vmatprep.subr.bf16.mxu0 %v1693_v32  ;;  %1554 = vmatpush3.bf16.msra.mxu1 %v1726_v42 }
  0x6c   :  { %1555 = vmatprep.subr.bf16.mxu1 %v1730_v55  ;;  %v1757_v55 = vld [vmem:[#allocation8 + $0x1e0] ss:$12 sps:$4 sm:$0xff]  }
  0x6e   :  { %938 = vmatpush1.bf16.msra.mxu0 %v1691_v36  ;;  %v1741_v36 = vld [vmem:[#allocation8 + $0x188] ss:$12 sps:$4 sm:$0xff]  }
  0x6f   :  { %939 = vmatprep.subr.bf16.mxu0 %v1696_v37  ;;  %1556 = vmatpush3.bf16.msra.mxu1 %v1731_v57  ;;  %v1764_v57 = vld [vmem:[#allocation8 + $0x1fc] ss:$12 sps:$4 sm:$0xff]  }
  0x70   :  { %1557 = vmatprep.subr.bf16.mxu1 %v1735_v59  ;;  %v1762_v59 = vld [vmem:[#allocation8 + $0x1f8] ss:$12 sps:$4 sm:$0xff]  }
  0x72   :  { %940 = vmatpush1.bf16.msra.mxu0 %v1694_v39  ;;  %v1745_v39 = vld [vmem:[#allocation8 + $0x260] ss:$12 sps:$4 sm:$0xff]  }
  0x73   :  { %941 = vmatprep.subr.bf16.mxu0 %v1699_v41  ;;  %1558 = vmatpush3.bf16.msra.mxu1 %v1736_v61  ;;  %v1769_v61 = vld [vmem:[#allocation8 + $0x214] ss:$12 sps:$4 sm:$0xff]  }
  0x74   :  { %1565 = vmatprep.subr.bf16.mxu1 %v1740_v63  ;;  %v1767_v63 = vld [vmem:[#allocation8 + $0x210] ss:$12 sps:$4 sm:$0xff]  }
  0x76   :  { %942 = vmatpush1.bf16.msra.mxu0 %v1697_v43  ;;  %v1742_v43 = vld [vmem:[#allocation8 + $0x198] ss:$12 sps:$4 sm:$0xff]  }
  0x77   :  { %943 = vmatprep.subr.bf16.mxu0 %v1704_v44  ;;  %v1746_v44 = vld [vmem:[#allocation8 + $0x1a0] ss:$12 sps:$4 sm:$0xff]  }
  0x7a   :  { %944 = vmatpush1.bf16.msra.mxu0 %v1702_v45  ;;  %v1749_v45 = vld [vmem:[#allocation8 + $0x1b4] ss:$12 sps:$4 sm:$0xff]  }
  0x7b   :  { %945 = vmatprep.subr.bf16.mxu0 %v1709_v46  ;;  %v1750_v46 = vld [vmem:[#allocation8 + $0x278] ss:$12 sps:$4 sm:$0xff]  }
  0x7e   :  { %946 = vmatpush1.bf16.msra.mxu0 %v1707_v47  ;;  %v1747_v47 = vld [vmem:[#allocation8 + $0x1b0] ss:$12 sps:$4 sm:$0xff]  }
  0x7f   :  { %947 = vmatprep.subr.bf16.mxu0 %v1714_v48  ;;  %v1751_v48 = vld [vmem:[#allocation8 + $0x1b8] ss:$12 sps:$4 sm:$0xff]  }
  0x82   :  { %948 = vmatpush1.bf16.msra.mxu0 %v1712_v49  ;;  %v1754_v49 = vld [vmem:[#allocation8 + $0x1cc] ss:$12 sps:$4 sm:$0xff]  }
  0x83   :  { %949 = vmatprep.subr.bf16.mxu0 %v1719_v50  ;;  %v1755_v50 = vld [vmem:[#allocation8 + $0x290] ss:$12 sps:$4 sm:$0xff]  }
  0x86   :  { %950 = vmatpush1.bf16.msra.mxu0 %v1717_v51  ;;  %v1752_v51 = vld [vmem:[#allocation8 + $0x1c8] ss:$12 sps:$4 sm:$0xff]  }
  0x87   :  { %951 = vmatprep.subr.bf16.mxu0 %v1724_v52  ;;  %v1756_v52 = vld [vmem:[#allocation8 + $0x1d0] ss:$12 sps:$4 sm:$0xff]  }
  0x8a   :  { %952 = vmatpush1.bf16.msra.mxu0 %v1722_v53  ;;  %v1759_v53 = vld [vmem:[#allocation8 + $0x1e4] ss:$12 sps:$4 sm:$0xff]  }
  0x8b   :  { %953 = vmatprep.subr.bf16.mxu0 %v1729_v54  ;;  %v1760_v54 = vld [vmem:[#allocation8 + $0x2a8] ss:$12 sps:$4 sm:$0xff]  }
  0x8e   :  { %954 = vmatpush1.bf16.msra.mxu0 %v1727_v56  ;;  %v1761_v56 = vld [vmem:[#allocation8 + $0x1e8] ss:$12 sps:$4 sm:$0xff]  }
  0x8f   :  { %955 = vmatprep.subr.bf16.mxu0 %v1734_v58  ;;  %v1765_v58 = vld [vmem:[#allocation8 + $0x2c0] ss:$12 sps:$4 sm:$0xff]  }
  0x92   :  { %956 = vmatpush1.bf16.msra.mxu0 %v1732_v60  ;;  %v1766_v60 = vld [vmem:[#allocation8 + $0x200] ss:$12 sps:$4 sm:$0xff]  }
  0x93   :  { %968 = vmatprep.subr.bf16.mxu0 %v1739_v62  ;;  %v1770_v62 = vld [vmem:[#allocation8 + $0x2d8] ss:$12 sps:$4 sm:$0xff]  }
 0x128   :  { %v204_v9 = vpop.f32.mrb[0].mxu0 }
 0x129   :  { %v205_v11 = vadd.f32 %v204_v9, %v101_v6  ;;  %v206_v12 = vpop.f32.mrb[1].mxu0  ;;  %v247_v18 = vpop.f32.mrb[0].mxu1  ;;  %v1779_v9 = vld [vmem:[#allocation8 + $0x244] ss:$12 sps:$4 sm:$0xff]  }
 0x12a   :  { %v207_v14 = vadd.f32 %v206_v12, %v105_v8  ;;  %v208_v15 = vpop.f32.mrb[2].mxu0  ;;  %v248_v20 = vadd.f32 %v247_v18, %v109_v10  ;;  %v249_v21 = vpop.f32.mrb[1].mxu1  ;;  %v1780_v12 = vld [vmem:[#allocation8 + $0x258] ss:$12 sps:$4 sm:$0xff]   ;;  %v1789_v18 = vld [vmem:[#allocation8 + $0x2a0] ss:$12 sps:$4 sm:$0xff]  }
 0x12b   :  { %v209_v16 = vadd.f32 %v208_v15, %v101_v6  ;;  %v210_v17 = vpop.f32.mrb[3].mxu0  ;;  %v256_v22 = vmax.f32 %v205_v11, 0.0  ;;  %v250_v24 = vadd.f32 %v249_v21, %v113_v13  ;;  %v251_v25 = vpop.f32.mrb[2].mxu1  ;;  %v1775_v6 = vld [vmem:[#allocation8 + $0x2f0] ss:$12 sps:$4 sm:$0xff]  }
 0x12c   :  { %v211_v19 = vadd.f32 %v210_v17, %v105_v8  ;;  %v257_v26 = vmax.f32 %v207_v14, 0.0  ;;  %v258_v28 = vmax.f32 %v248_v20, 0.0  ;;  %v252_v29 = vadd.f32 %v251_v25, %v109_v10  ;;  %v253_v30 = vpop.f32.mrb[3].mxu1  ;;  %v1776_v8 = vld [vmem:[#allocation8 + $0x230] ss:$12 sps:$4 sm:$0xff]   ;;  %v1801_v25 = vld [vmem:[#allocation9 + $0x40] sm:$0xff]  }
 0x12d   :  { %v260_v23 = vmax.f32 %v209_v16, 0.0  ;;  %v259_v32 = vmax.f32 %v250_v24, 0.0  ;;  %v254_v33 = vadd.f32 %v253_v30, %v113_v13  ;;  %v1777_v10 = vld [vmem:[#allocation8 + $0x240] ss:$12 sps:$4 sm:$0xff]   ;;  %v1782_v11 = vld [vmem:[#allocation8 + $0x25c] ss:$12 sps:$4 sm:$0xff]  }
 0x12e   :  { %v261_v27 = vmax.f32 %v211_v19, 0.0  ;;  %v262_v37 = vmax.f32 %v252_v29, 0.0  ;;  %v1785_v13 = vld [vmem:[#allocation8 + $0x274] ss:$12 sps:$4 sm:$0xff]   ;;  %v1783_v14 = vld [vmem:[#allocation8 + $0x270] ss:$12 sps:$4 sm:$0xff]  }
 0x12f   :  { %v264_v31 = vpack.c.bf16 %v260_v23, %v256_v22  ;;  %v263_v40 = vmax.f32 %v254_v33, 0.0  ;;  %v1788_v15 = vld [vmem:[#allocation8 + $0x28c] ss:$12 sps:$4 sm:$0xff]   ;;  %v1786_v16 = vld [vmem:[#allocation8 + $0x288] ss:$12 sps:$4 sm:$0xff]   ;;  %v1809_v33 = vld [vmem:[#allocation9 + $0x60] sm:$0xff]  }
 0x130   :  { %v265_v34 = vpack.c.bf16 %v261_v27, %v257_v26  ;;  %v2081_v41 = vpack.c.bf16 %v262_v37, %v258_v28  ;;  %v1791_v17 = vld [vmem:[#allocation8 + $0x2a4] ss:$12 sps:$4 sm:$0xff]   ;;  %v1794_v19 = vld [vmem:[#allocation8 + $0x2bc] ss:$12 sps:$4 sm:$0xff]   ;;  %v1797_v21 = vld [vmem:[#allocation8 + $0x2d4] ss:$12 sps:$4 sm:$0xff]  }
 0x131   :  { %v267_v42 = vpack.c.bf16 %v263_v40, %v259_v32  ;;  %v1792_v20 = vld [vmem:[#allocation8 + $0x2b8] ss:$12 sps:$4 sm:$0xff]   ;;  %v1795_v22 = vld [vmem:[#allocation8 + $0x2d0] ss:$12 sps:$4 sm:$0xff]   ;;  %v1798_v24 = vld [vmem:[#allocation8 + $0x2e8] ss:$12 sps:$4 sm:$0xff]  }
 0x132   :  { %957 = vmatprep.mubr.bf16.mxu0 %v265_v34  ;;  %1043 = vmatprep.mubr.bf16.mxu1 %v265_v34  ;;  %v1800_v23 = vld [vmem:[#allocation8 + $0x2ec] ss:$12 sps:$4 sm:$0xff]   ;;  %v1802_v26 = vld [vmem:[#allocation9] sm:$0xff]   ;;  %v1805_v29 = vld [vmem:[#allocation9 + $0x50] sm:$0xff]  }
 0x133   :  { %958 = vmatmul.mubr.bf16.vlgmr.msra.gmra.mrb[4].mxu0 %v264_v31  ;;  %1044 = vmatmul.mubr.bf16.vlgmr.msra.gmra.mrb[4].mxu1 %v264_v31  ;;  %v1803_v27 = vld [vmem:[#allocation9 + $0x48] sm:$0xff]   ;;  %v1806_v30 = vld [vmem:[#allocation9 + $0x10] sm:$0xff]   ;;  %v1807_v31 = vld [vmem:[#allocation9 + $0x58] sm:$0xff]  }
 0x134   :  { %969 = vmatpush1.bf16.msra.mxu0 %v1737_v35  ;;  %1566 = vmatpush3.bf16.msra.mxu1 %v1741_v36  ;;  %v1804_v28 = vld [vmem:[#allocation9 + $0x8] sm:$0xff]   ;;  %v1808_v32 = vld [vmem:[#allocation9 + $0x18] sm:$0xff]   ;;  %v1810_v34 = vld [vmem:[#allocation9 + $0x20] sm:$0xff]  }
 0x135   :  { %970 = vmatprep.subr.bf16.mxu0 %v1744_v38  ;;  %1567 = vmatprep.subr.bf16.mxu1 %v1745_v39  ;;  %v1811_v35 = vld [vmem:[#allocation9 + $0x68] sm:$0xff]   ;;  %v1813_v37 = vld [vmem:[#allocation9 + $0x70] sm:$0xff]   ;;  %v1815_v39 = vld [vmem:[#allocation9 + $0x78] sm:$0xff]  }
 0x136   :  { %1084 = vmatprep.mubr.bf16.mxu1 %v267_v42  ;;  %1000 = vmatprep.mubr.bf16.mxu0 %v267_v42  ;;  %v1812_v36 = vld [vmem:[#allocation9 + $0x28] sm:$0xff]   ;;  %v1814_v38 = vld [vmem:[#allocation9 + $0x30] sm:$0xff]   ;;  %v1816_v40 = vld [vmem:[#allocation9 + $0x38] sm:$0xff]  }
 0x138   :  { %971 = vmatpush1.bf16.msra.mxu0 %v1742_v43  ;;  %1568 = vmatpush3.bf16.msra.mxu1 %v1746_v44 }
 0x139   :  { %972 = vmatprep.subr.bf16.mxu0 %v1749_v45  ;;  %1569 = vmatprep.subr.bf16.mxu1 %v1750_v46 }
 0x13c   :  { %973 = vmatpush1.bf16.msra.mxu0 %v1747_v47  ;;  %1570 = vmatpush3.bf16.msra.mxu1 %v1751_v48  ;;  %v396_v48 = vld [vmem:[%s2126_s5] sm:$0x7] }
 0x13d   :  { %974 = vmatprep.subr.bf16.mxu0 %v1754_v49  ;;  %1571 = vmatprep.subr.bf16.mxu1 %v1755_v50  ;;  %v409_v49 = vrot.slane %v396_v48, %v108_v5 }
 0x140   :  { %975 = vmatpush1.bf16.msra.mxu0 %v1752_v51  ;;  %1572 = vmatpush3.bf16.msra.mxu1 %v1756_v52 }
 0x141   :  { %976 = vmatprep.subr.bf16.mxu0 %v1759_v53  ;;  %1573 = vmatprep.subr.bf16.mxu1 %v1760_v54 }
 0x144   :  { %977 = vmatpush1.bf16.msra.mxu0 %v1757_v55  ;;  %1574 = vmatpush3.bf16.msra.mxu1 %v1761_v56 }
 0x145   :  { %978 = vmatprep.subr.bf16.mxu0 %v1764_v57  ;;  %1575 = vmatprep.subr.bf16.mxu1 %v1765_v58 }
 0x148   :  { %979 = vmatpush1.bf16.msra.mxu0 %v1762_v59  ;;  %1576 = vmatpush3.bf16.msra.mxu1 %v1766_v60 }
 0x149   :  { %980 = vmatprep.subr.bf16.mxu0 %v1769_v61  ;;  %1577 = vmatprep.subr.bf16.mxu1 %v1770_v62 }
 0x14c   :  { %981 = vmatpush1.bf16.msra.mxu0 %v1767_v63  ;;  %1578 = vmatpush3.bf16.msra.mxu1 %v1771_v0  ;;  %v401_v63 = vrot.slane %v396_v48, %v100_v2  ;;  %v405_v0 = vrot.slane %v396_v48, %v104_v4  ;;  %v1819_v2 = vld [vmem:[#allocation9 + $0x90] sm:$0xff]   ;;  %v1820_v4 = vld [vmem:[#allocation9 + $0x98] sm:$0xff]  }
 0x14d   :  { %982 = vmatprep.subr.bf16.mxu0 %v1774_v3  ;;  %1579 = vmatprep.subr.bf16.mxu1 %v1775_v6 }
 0x150   :  { %983 = vmatpush1.bf16.msra.mxu0 %v1772_v7  ;;  %1580 = vmatpush3.bf16.msra.mxu1 %v1776_v8 }
 0x151   :  { %984 = vmatprep.subr.bf16.mxu0 %v1779_v9  ;;  %1587 = vmatprep.subr.bf16.mxu1 %v1801_v25 }
 0x153   :  { %1085 = vmatmul.mubr.bf16.vlgmr.msra.gmra.mrb[8].mxu1 %v2081_v41 }
 0x154   :  { %985 = vmatpush1.bf16.msra.mxu0 %v1777_v10  ;;  %1588 = vmatpush3.bf16.msra.mxu1 %v1802_v26 }
 0x155   :  { %986 = vmatprep.subr.bf16.mxu0 %v1782_v11  ;;  %1589 = vmatprep.subr.bf16.mxu1 %v1803_v27 }
 0x158   :  { %987 = vmatpush1.bf16.msra.mxu0 %v1780_v12  ;;  %1590 = vmatpush3.bf16.msra.mxu1 %v1804_v28 }
 0x159   :  { %988 = vmatprep.subr.bf16.mxu0 %v1785_v13  ;;  %1591 = vmatprep.subr.bf16.mxu1 %v1805_v29  ;;  %v1518_v29 = vld [vmem:[%s2128_s7] ss:$0 sm:$0xff]  ;;  %s1917_s7 = scalar_lea.vmem %s1396_s17, 256 }
 0x15a   :  { %p1918_p4 = scmp.ne.s32.totalorder %s1396_s17, %s1917_s7  ;;  %p1923_p6 = scmp.lt.s32.totalorder %s1917_s7, %s1917_s7 }
 0x15c   :  { %989 = vmatpush1.bf16.msra.mxu0 %v1783_v14  ;;  %1592 = vmatpush3.bf16.msra.mxu1 %v1806_v30  ;;  %p1924_p7 = por %p1923_p6, %p1922_p5 }
 0x15d   :  { %990 = vmatprep.subr.bf16.mxu0 %v1788_v15  ;;  %1593 = vmatprep.subr.bf16.mxu1 %v1807_v31 }
 0x15e   :  { %p1925_p8 = pnand %p1924_p7, %p1918_p4 }
 0x160   :  { %991 = vmatpush1.bf16.msra.mxu0 %v1786_v16  ;;  %1594 = vmatpush3.bf16.msra.mxu1 %v1808_v32 }
 0x161   :  { %992 = vmatprep.subr.bf16.mxu0 %v1791_v17  ;;  %1595 = vmatprep.subr.bf16.mxu1 %v1809_v33 }
 0x164   :  { %993 = vmatpush1.bf16.msra.mxu0 %v1789_v18  ;;  %1596 = vmatpush3.bf16.msra.mxu1 %v1810_v34  ;;  %v1817_v18 = vld [vmem:[#allocation9 + $0x80] sm:$0xff]  }
 0x165   :  { %994 = vmatprep.subr.bf16.mxu0 %v1794_v19  ;;  %1597 = vmatprep.subr.bf16.mxu1 %v1811_v35  ;;  %v1821_v19 = vld [vmem:[#allocation9 + $0xa0] sm:$0xff]  }
 0x168   :  { %995 = vmatpush1.bf16.msra.mxu0 %v1792_v20  ;;  %1598 = vmatpush3.bf16.msra.mxu1 %v1812_v36  ;;  %v1822_v20 = vld [vmem:[#allocation9 + $0xa8] sm:$0xff]  }
 0x169   :  { %996 = vmatprep.subr.bf16.mxu0 %v1797_v21  ;;  %1599 = vmatprep.subr.bf16.mxu1 %v1813_v37  ;;  %v1823_v21 = vld [vmem:[#allocation9 + $0xb0] sm:$0xff]  }
 0x16c   :  { %997 = vmatpush1.bf16.msra.mxu0 %v1795_v22  ;;  %1600 = vmatpush3.bf16.msra.mxu1 %v1814_v38  ;;  %v1824_v22 = vld [vmem:[#allocation9 + $0xb8] sm:$0xff]   ;;  %v1385_v38 = vstv %s2121_s0 }
 0x16d   :  { %998 = vmatprep.subr.bf16.mxu0 %v1800_v23  ;;  %1601 = vmatprep.subr.bf16.mxu1 %v1815_v39 }
 0x170   :  { %999 = vmatpush1.bf16.msra.mxu0 %v1798_v24  ;;  %1602 = vmatpush3.bf16.msra.mxu1 %v1816_v40 }
 0x173   :  { %1001 = vmatmul.mubr.bf16.vlgmr.msra.gmra.mrb[4].mxu0 %v2081_v41  ;;  %v1958_v41 = vmov 0.0  }
 0x174   :  { %1618 = vmatprep.subr.bf16.mxu1 %v1958_v41 }
 0x206   :  { %v1559_v42 = vpop.f32.mrb[4].mxu1 }
 0x207   :  { %v1560_v43 = vpop.f32.mrb[5].mxu1 }
 0x208   :  { %v1561_v44 = vadd.f32 %v1560_v43, %v1559_v42  ;;  %v1562_v45 = vpop.f32.mrb[6].mxu1 }
 0x209   :  { %v1563_v46 = vpop.f32.mrb[7].mxu1 }
 0x20a   :  { %v1564_v47 = vadd.f32 %v1563_v46, %v1562_v45  ;;  %v1046_v52 = vadd.f32 %v1561_v44, %v409_v49 }
 0x20c   :  { %v1049_v56 = vadd.f32 %v1564_v47, %v409_v49 }
 0x226   :  { %v1581_v50 = vpop.f32.mrb[8].mxu1 }
 0x227   :  { %v1582_v51 = vpop.f32.mrb[9].mxu1 }
 0x228   :  { %v1583_v53 = vadd.f32 %v1582_v51, %v1581_v50  ;;  %v1584_v54 = vpop.f32.mrb[10].mxu1 }
 0x229   :  { %v1585_v55 = vpop.f32.mrb[11].mxu1 }
 0x22a   :  { %v1087_v57 = vadd.f32 %v1583_v53, %v1046_v52  ;;  %v1586_v58 = vadd.f32 %v1585_v55, %v1584_v54 }
 0x22c   :  { %v1090_v59 = vadd.f32 %v1586_v58, %v1049_v56  ;;  %v1095_v60 = vmax.f32 %v1087_v57, 0.0 }
 0x22e   :  { %v1098_v61 = vmax.f32 %v1090_v59, 0.0 }
 0x230   :  { %v1101_v62 = vpack.c.bf16 %v1098_v61, %v1095_v60 }
 0x246   :  { %v1002_v5 = vpop.f32.mrb[4].mxu0 }
 0x247   :  { %v1638_v3 = vadd.f32 %v1002_v5, %v401_v63  ;;  %v1004_v6 = vpop.f32.mrb[5].mxu0 }
 0x248   :  { %v1639_v7 = vadd.f32 %v1004_v6, %v405_v0  ;;  %v1006_v8 = vpop.f32.mrb[6].mxu0 }
 0x249   :  { %v1640_v9 = vadd.f32 %v1006_v8, %v401_v63  ;;  %v1008_v10 = vpop.f32.mrb[7].mxu0  ;;  %v1093_v12 = vmax.f32 %v1638_v3, 0.0 }
 0x24a   :  { %v1641_v11 = vadd.f32 %v1008_v10, %v405_v0  ;;  %v1094_v14 = vmax.f32 %v1639_v7, 0.0 }
 0x24b   :  { %v1096_v13 = vmax.f32 %v1640_v9, 0.0 }
 0x24c   :  { %v1097_v15 = vmax.f32 %v1641_v11, 0.0 }
 0x24d   :  { %v1099_v16 = vpack.c.bf16 %v1096_v13, %v1093_v12 }
 0x24e   :  { %v1100_v17 = vpack.c.bf16 %v1097_v15, %v1094_v14 }
 0x250   :  { %1333 = vmatprep.mubr.bf16.mxu1 %v1100_v17 }
 0x251   :  { %1334 = vmatmul.mubr.bf16.vlgmr.msra.gmra.mrb[12].mxu1 %v1099_v16 }
 0x252   :  { %1619 = vmatpush3.bf16.msra.mxu1 %v1817_v18  ;;  %1634 = vmatprep.mubr.msk.bf16.mxu1 %vm1959_vm2, %v1958_v41 }
 0x253   :  { %1620 = vmatprep.subr.bf16.mxu1 %v1958_v41 }
 0x256   :  { %1621 = vmatpush3.bf16.msra.mxu1 %v1818_v1 }
 0x257   :  { %1622 = vmatprep.subr.bf16.mxu1 %v1958_v41 }
 0x25a   :  { %1623 = vmatpush3.bf16.msra.mxu1 %v1819_v2 }
 0x25b   :  { %1624 = vmatprep.subr.bf16.mxu1 %v1958_v41 }
 0x25e   :  { %1625 = vmatpush3.bf16.msra.mxu1 %v1820_v4 }
 0x25f   :  { %1626 = vmatprep.subr.bf16.mxu1 %v1958_v41 }
 0x262   :  { %1627 = vmatpush3.bf16.msra.mxu1 %v1821_v19 }
 0x263   :  { %1628 = vmatprep.subr.bf16.mxu1 %v1958_v41 }
 0x266   :  { %1629 = vmatpush3.bf16.msra.mxu1 %v1822_v20 }
 0x267   :  { %1630 = vmatprep.subr.bf16.mxu1 %v1958_v41 }
 0x26a   :  { %1631 = vmatpush3.bf16.msra.mxu1 %v1823_v21 }
 0x26b   :  { %1632 = vmatprep.subr.bf16.mxu1 %v1958_v41 }
 0x26e   :  { %1633 = vmatpush3.bf16.msra.mxu1 %v1824_v22 }
 0x271   :  { %1635 = vmatmul.mubr.bf16.vlgmr.msra.gmra.mrb[16].mxu1 %v1101_v62 }
 0x324   :  { %v1603_v23 = vpop.f32.mrb[12].mxu1 }
 0x325   :  { %v1604_v24 = vpop.f32.mrb[13].mxu1 }
 0x326   :  { %v1605_v25 = vadd.f32 %v1604_v24, %v1603_v23  ;;  %v1606_v26 = vpop.f32.mrb[14].mxu1 }
 0x327   :  { %v1607_v27 = vpop.f32.mrb[15].mxu1 }
 0x328   :  { %v1608_v28 = vadd.f32 %v1607_v27, %v1606_v26  ;;  %v1336_v30 = vadd.f32 %v1605_v25, %v1518_v29 }
 0x32a   :  { %v1339_v34 = vadd.f32 %v1608_v28, %v1518_v29 }
 0x344   :  { %v1376_v31 = vpop.f32.mrb[16].mxu1 }
 0x345   :  { %v1377_v32 = vadd.f32 %v1376_v31, %v1336_v30  ;;  %v1636_v33 = vpop.f32.mrb[17].mxu1 }
 0x346   :  { %v1379_v35 = vpop.f32.mrb[18].mxu1 }
 0x347   :  { %1825 = vtanh.f32 %v1377_v32  ;;  %v1380_v36 = vadd.f32 %v1379_v35, %v1339_v34  ;;  %v1637_v37 = vpop.f32.mrb[19].mxu1 }
 0x349   :  { %1827 = vtanh.f32 %v1380_v36 }
 0x351   :  { %v1826_v39 = vpop.eup %1825 }
 0x352   :  { %v1386_v40 = vmul.f32 %v1826_v39, %v1385_v38 }
 0x353   :  { %v1828_v41 = vpop.eup %1827 }
 0x354   :  { %v1387_v42 = vmul.f32 %v1828_v41, %v1385_v38  ;;  %1388 = vst [vmem:[#allocation11] sm:$0xff] %v1386_v40 }
 0x356   :  { %1389 = vst [vmem:[#allocation11 + $0x8] sm:$0xff] %v1387_v42 }
 0x357   :  { %1928 = shalt.err (!%p1925_p8)
}
 0x358   :  { %s1929_s0 = scalar_lea.hbm %s2129_s8, 256 }
 0x359   :  { %p1930_p9 = scmp.ne.s32.totalorder %s2129_s8, %s1929_s0  ;;  %p1933_p10 = scmp.lt.u32.totalorder %s1929_s0, %s2129_s8 }
 0x35b   :  { %p1935_p11 = pnand %p1933_p10, %p1930_p9 }
 0x35d   :  { %1938 = shalt.err (!%p1935_p11)
}
 0x35e   :  { %s1961_s23 = smov 128   ;;  %s1962_s24 = smov 8  }
 0x35f   :  { %1401 = dma.vmem_to_hbm [thread:$0]  %s1396_s17, 256, %s2129_s8, [#allocation5], %s1961_s23, %s1961_s23, %s1962_s24  }
 0x360   :  { %1945 = dma.done.wait [#allocation5], 256  }
 0x361   :  { %1946 = vsyncadd [#allocation5], 4294967040 }
 0x362   :  { %1405 = vsyncpa [#allocation4], 1 }
 0x363   :  { %1406 = vsyncpa [#allocation7], 1 }
 0x364   :  { %1407 = vsyncpa [#allocation10], 1 }
 0x365   :  { %1408 = vsyncpa [#allocation5], 1 }

// kernel: tpu_custom_call.1
= control target key start
LH: loop header
LB: loop body
LE: loop exit
PB: predicated region body
PF: predicated region fallthrough
CT: control target
= control target key end

     0   :  { %14 = vsyncpa [#allocation4], 0  ;;  %s2121_s0 = inlined_call_operand.<no memory space> [shape: f32[1,1], index: 0, kind: input, shape index: {}]   ;;  %s2122_s1 = inlined_call_operand.hbm [shape: bf16[16,24], index: 1, kind: input, shape index: {}]   ;;  %s2123_s2 = inlined_call_operand.hbm [shape: bf16[24,512], index: 2, kind: input, shape index: {}]   ;;  %s2124_s3 = inlined_call_operand.vmem [shape: f32[1,512], index: 3, kind: input, shape index: {}]   ;;  %s2125_s4 = inlined_call_operand.hbm [shape: bf16[512,384], index: 4, kind: input, shape index: {}]   ;;  %s2126_s5 = inlined_call_operand.vmem [shape: f32[1,384], index: 5, kind: input, shape index: {}]   ;;  %s2127_s6 = inlined_call_operand.hbm [shape: bf16[384,128], index: 6, kind: input, shape index: {}]   ;;  %s2128_s7 = inlined_call_operand.vmem [shape: f32[1,128], index: 7, kind: input, shape index: {}]   ;;  %s2129_s8 = inlined_call_operand.hbm [shape: f32[16,128], index: 8, kind: output, shape index: {}]  }
   0x1   :  { %15 = vsyncpa [#allocation7], 0 }
   0x2   :  { %16 = vsyncpa [#allocation10], 0 }
   0x3   :  { %17 = vsyncpa [#allocation5], 0  ;;  %s1947_s27 = smov [#allocation6]   ;;  %s1829_s9 = scalar_lea.hbm %s2123_s2, 768 }
   0x4   :  { %s37_s28 = sshll.u32 %s1947_s27, 4  ;;  %p1830_p0 = scmp.ne.s32.totalorder %s2123_s2, %s1829_s9  ;;  %s38_s28 = int_to_ptr.vmem [resolvable:$true] %s37_s28 }
   0x5   :  { %p1833_p1 = scmp.lt.u32.totalorder %s1829_s9, %s2123_s2 }
   0x7   :  { %p1835_p2 = pnand %p1833_p1, %p1830_p0 }
   0x9   :  { %1838 = shalt.err (!%p1835_p2)
}
   0xa   :  { %s1839_s14 = scalar_lea.vmem %s38_s28, 768  ;;  %p1844_p4 = scmp.lt.s32.totalorder %s38_s28, %s38_s28 }
   0xb   :  { %p1840_p3 = scmp.ne.s32.totalorder %s38_s28, %s1839_s14  ;;  %p1845_p5 = scmp.lt.s32.totalorder %s1839_s14, %s1839_s14 }
   0xd   :  { %p1846_p6 = por %p1845_p5, %p1844_p4 }
   0xf   :  { %p1847_p7 = pnand %p1846_p6, %p1840_p3 }
  0x11   :  { %1850 = shalt.err (!%p1847_p7)
}
  0x12   :  { %s1948_s15 = smov 256   ;;  %s1949_s16 = smov 16  }
  0x13   :  { %43 = dma.hbm_to_vmem [thread:$0]  %s2123_s2, 768, %s38_s28, [#allocation7], %s1948_s15, %s1948_s15, %s1949_s16  }
  0x14   :  { %s1950_s19 = smov [#allocation3]   ;;  %s1851_s23 = scalar_lea.hbm %s2122_s1, 128 }
  0x15   :  { %s25_s20 = sshll.u32 %s1950_s19, 4  ;;  %p1852_p8 = scmp.ne.s32.totalorder %s2122_s1, %s1851_s23  ;;  %s26_s20 = int_to_ptr.vmem [resolvable:$true] %s25_s20 }
  0x16   :  { %p1855_p9 = scmp.lt.u32.totalorder %s1851_s23, %s2122_s1 }
  0x18   :  { %p1857_p10 = pnand %p1855_p9, %p1852_p8 }
  0x1a   :  { %1860 = shalt.err (!%p1857_p10)
}
  0x1b   :  { %s1861_s29 = scalar_lea.vmem %s26_s20, 128  ;;  %p1866_p12 = scmp.lt.s32.totalorder %s26_s20, %s26_s20 }
  0x1c   :  { %p1862_p11 = scmp.ne.s32.totalorder %s26_s20, %s1861_s29  ;;  %p1867_p13 = scmp.lt.s32.totalorder %s1861_s29, %s1861_s29 }
  0x1e   :  { %p1868_p0 = por %p1867_p13, %p1866_p12 }
  0x20   :  { %p1869_p1 = pnand %p1868_p0, %p1862_p11 }
  0x22   :  { %1872 = shalt.err (!%p1869_p1)
}
  0x23   :  { %s1951_s2 = smov 64   ;;  %s1952_s28 = smov 4  }
  0x24   :  { %31 = dma.hbm_to_vmem [thread:$0]  %s2122_s1, 128, %s26_s20, [#allocation4], %s1951_s2, %s1951_s2, %s1952_s28  }
  0x25   :  { %s1953_s10 = smov [#allocation8]   ;;  %s1873_s14 = scalar_lea.hbm %s2125_s4, 12288 }
  0x26   :  { %s51_s11 = sshll.u32 %s1953_s10, 4  ;;  %p1874_p2 = scmp.ne.s32.totalorder %s2125_s4, %s1873_s14  ;;  %s52_s11 = int_to_ptr.vmem [resolvable:$true] %s51_s11 }
  0x27   :  { %p1877_p3 = scmp.lt.u32.totalorder %s1873_s14, %s2125_s4 }
  0x29   :  { %p1879_p4 = pnand %p1877_p3, %p1874_p2 }
  0x2b   :  { %1882 = shalt.err (!%p1879_p4)
}
  0x2c   :  { %s1883_s19 = scalar_lea.vmem %s52_s11, 12288  ;;  %p1888_p6 = scmp.lt.s32.totalorder %s52_s11, %s52_s11 }
  0x2d   :  { %p1884_p5 = scmp.ne.s32.totalorder %s52_s11, %s1883_s19  ;;  %p1889_p7 = scmp.lt.s32.totalorder %s1883_s19, %s1883_s19 }
  0x2f   :  { %p1890_p8 = por %p1889_p7, %p1888_p6 }
  0x31   :  { %p1891_p9 = pnand %p1890_p8, %p1884_p5 }
  0x33   :  { %1894 = shalt.err (!%p1891_p9)
}
  0x34   :  { %s1954_s1 = smov 192   ;;  %s1955_s20 = smov 12  }
  0x35   :  { %57 = dma.hbm_to_vmem [thread:$0]  %s2125_s4, 12288, %s52_s11, [#allocation7], %s1954_s1, %s1954_s1, %s1955_s20  }
  0x36   :  { %s1956_s23 = smov [#allocation9]   ;;  %s1895_s27 = scalar_lea.hbm %s2127_s6, 3072 }
  0x37   :  { %s65_s24 = sshll.u32 %s1956_s23, 4  ;;  %p1896_p10 = scmp.ne.s32.totalorder %s2127_s6, %s1895_s27  ;;  %s66_s24 = int_to_ptr.vmem [resolvable:$true] %s65_s24 }
  0x38   :  { %p1899_p11 = scmp.lt.u32.totalorder %s1895_s27, %s2127_s6 }
  0x3a   :  { %p1901_p12 = pnand %p1899_p11, %p1896_p10 }
  0x3c   :  { %1904 = shalt.err (!%p1901_p12)
}
  0x3d   :  { %s1905_s12 = scalar_lea.vmem %s66_s24, 3072  ;;  %p1910_p0 = scmp.lt.s32.totalorder %s66_s24, %s66_s24 }
  0x3e   :  { %p1906_p13 = scmp.ne.s32.totalorder %s66_s24, %s1905_s12  ;;  %p1911_p1 = scmp.lt.s32.totalorder %s1905_s12, %s1905_s12 }
  0x40   :  { %p1912_p2 = por %p1911_p1, %p1910_p0 }
  0x42   :  { %p1913_p3 = pnand %p1912_p2, %p1906_p13 }
  0x44   :  { %1916 = shalt.err (!%p1913_p3)
}
  0x45   :  { %71 = dma.hbm_to_vmem [thread:$0]  %s2127_s6, 3072, %s66_s24, [#allocation10], %s1951_s2, %s1951_s2, %s1952_s28  }
  0x46   :  { %1939 = dma.done.wait [#allocation4], 128  }
  0x47   :  { %1940 = vsyncadd [#allocation4], 4294967168 }
  0x48   :  { %1941 = dma.done.wait [#allocation7], 13056  }
  0x49   :  { %1942 = vsyncadd [#allocation7], 4294954240 }
  0x4a   :  { %1943 = dma.done.wait [#allocation10], 3072  }
  0x4b   :  { %1944 = vsyncadd [#allocation10], 4294964224  ;;  %v1957_v0 = vmov 0   ;;  %v1662_v1 = vld [vmem:[#allocation6 + $0x4] ss:$16 sps:$4 sm:$0xff]   ;;  %vm157_vm0 = vcmask 1043456  }
  0x4c   :  { %202 = vmatprep.mubr.bf16.mxu0 %v1957_v0  ;;  %245 = vmatprep.mubr.bf16.mxu1 %v1957_v0  ;;  %v1664_v2 = vld [vmem:[#allocation6] ss:$16 sps:$4 sm:$0xff]   ;;  %v1668_v6 = vld [vmem:[#allocation6 + $0xc] ss:$16 sps:$4 sm:$0xff]   ;;  %v1670_v7 = vld [vmem:[#allocation6 + $0x8] ss:$16 sps:$4 sm:$0xff]   ;;  %v98_v0 = vlaneseq }
  0x4d   :  { %v94_v3 = vld [vmem:[#allocation6 + $0x20] sm:$0xff]  ;;  %170 = vmatprep.subr.bf16.mxu0 %v1662_v1  ;;  %v95_v9 = vld [vmem:[#allocation6 + $0x28] sm:$0xff]  ;;  %213 = vmatprep.subr.bf16.mxu1 %v1668_v6  ;;  %v1667_v13 = vld [vmem:[#allocation3] sm:$0xff]   ;;  %vm153_vm1 = vcmask 195584   ;;  %vm1959_vm2 = vmmov 0   ;;  %s1960_s16 = smov [#allocation11]  }
  0x4e   :  { %v1415_v4 = vcombine.high %v94_v3, %v94_v3  ;;  %v1414_v5 = vcombine.low %v94_v3, %v94_v3  ;;  %171 = vmatpush1.bf16.msra.mxu0 %v1664_v2  ;;  %v1417_v10 = vcombine.high %v95_v9, %v95_v9  ;;  %v1416_v11 = vcombine.low %v95_v9, %v95_v9  ;;  %v1675_v12 = vld [vmem:[#allocation8 + $0x4] ss:$12 sps:$4 sm:$0xff]   ;;  %v1673_v15 = vld [vmem:[#allocation8] ss:$12 sps:$4 sm:$0xff]   ;;  %v1678_v16 = vld [vmem:[#allocation8 + $0x1c] ss:$12 sps:$4 sm:$0xff]  }
  0x4f   :  { %214 = vmatpush1.bf16.msra.mxu1 %v1670_v7  ;;  %v1676_v17 = vld [vmem:[#allocation8 + $0x18] ss:$12 sps:$4 sm:$0xff]   ;;  %v1681_v18 = vld [vmem:[#allocation8 + $0x34] ss:$12 sps:$4 sm:$0xff]   ;;  %v1679_v19 = vld [vmem:[#allocation8 + $0x30] ss:$12 sps:$4 sm:$0xff]  }
  0x50   :  { %1418 = vmatprep.subr.msk.bf16.mxu0 %vm157_vm0, %v1415_v4  ;;  %v159_v8 = vsel %vm157_vm0, %v1414_v5, 0  ;;  %1420 = vmatprep.subr.msk.bf16.mxu1 %vm157_vm0, %v1417_v10  ;;  %v165_v14 = vsel %vm157_vm0, %v1416_v11, 0  ;;  %v1684_v20 = vld [vmem:[#allocation8 + $0x4c] ss:$12 sps:$4 sm:$0xff]   ;;  %v1700_v21 = vld [vmem:[#allocation8 + $0xc8] ss:$12 sps:$4 sm:$0xff]  }
  0x51   :  { %v1701_v22 = vld [vmem:[#allocation8 + $0x8] ss:$12 sps:$4 sm:$0xff]   ;;  %v1687_v24 = vld [vmem:[#allocation8 + $0x64] ss:$12 sps:$4 sm:$0xff]   ;;  %v1705_v25 = vld [vmem:[#allocation8 + $0xe0] ss:$12 sps:$4 sm:$0xff]  }
  0x52   :  { %173 = vmatpush1.bf16.msra.mxu0 %v159_v8  ;;  %v1682_v23 = vld [vmem:[#allocation8 + $0x48] ss:$12 sps:$4 sm:$0xff]   ;;  %v1706_v26 = vld [vmem:[#allocation8 + $0x20] ss:$12 sps:$4 sm:$0xff]   ;;  %v1710_v29 = vld [vmem:[#allocation8 + $0xf8] ss:$12 sps:$4 sm:$0xff]  }
  0x53   :  { %925 = vmatprep.subr.bf16.mxu0 %v1675_v12  ;;  %216 = vmatpush1.bf16.msra.mxu1 %v165_v14  ;;  %v1685_v27 = vld [vmem:[#allocation8 + $0x60] ss:$12 sps:$4 sm:$0xff]   ;;  %v1690_v28 = vld [vmem:[#allocation8 + $0x7c] ss:$12 sps:$4 sm:$0xff]   ;;  %v1711_v30 = vld [vmem:[#allocation8 + $0x38] ss:$12 sps:$4 sm:$0xff]  }
  0x54   :  { %1543 = vmatprep.subr.bf16.mxu1 %v1700_v21  ;;  %v1688_v31 = vld [vmem:[#allocation8 + $0x78] ss:$12 sps:$4 sm:$0xff]   ;;  %v1693_v32 = vld [vmem:[#allocation8 + $0x94] ss:$12 sps:$4 sm:$0xff]   ;;  %v1715_v33 = vld [vmem:[#allocation8 + $0x110] ss:$12 sps:$4 sm:$0xff]  }
  0x55   :  { %1419 = vmatmul.mubr.msk.bf16.vlgmr.msra.gmra.mrb[0].mxu0 %vm153_vm1, %v1667_v13  ;;  %v1716_v34 = vld [vmem:[#allocation8 + $0x50] ss:$12 sps:$4 sm:$0xff]   ;;  %v1720_v35 = vld [vmem:[#allocation8 + $0x128] ss:$12 sps:$4 sm:$0xff]   ;;  %v1696_v37 = vld [vmem:[#allocation8 + $0xac] ss:$12 sps:$4 sm:$0xff]  }
  0x56   :  { %926 = vmatpush1.bf16.msra.mxu0 %v1673_v15  ;;  %1421 = vmatmul.mubr.msk.bf16.vlgmr.msra.gmra.mrb[0].mxu1 %vm153_vm1, %v1667_v13  ;;  %v1691_v36 = vld [vmem:[#allocation8 + $0x90] ss:$12 sps:$4 sm:$0xff]   ;;  %v1721_v38 = vld [vmem:[#allocation8 + $0x68] ss:$12 sps:$4 sm:$0xff]   ;;  %v1725_v40 = vld [vmem:[#allocation8 + $0x140] ss:$12 sps:$4 sm:$0xff]  }
  0x57   :  { %927 = vmatprep.subr.bf16.mxu0 %v1678_v16  ;;  %1544 = vmatpush3.bf16.msra.mxu1 %v1701_v22  ;;  %v1694_v39 = vld [vmem:[#allocation8 + $0xa8] ss:$12 sps:$4 sm:$0xff]   ;;  %v1699_v41 = vld [vmem:[#allocation8 + $0xc4] ss:$12 sps:$4 sm:$0xff]   ;;  %v1726_v42 = vld [vmem:[#allocation8 + $0x80] ss:$12 sps:$4 sm:$0xff]  }
  0x58   :  { %1545 = vmatprep.subr.bf16.mxu1 %v1705_v25  ;;  %v1697_v43 = vld [vmem:[#allocation8 + $0xc0] ss:$12 sps:$4 sm:$0xff]   ;;  %v1704_v44 = vld [vmem:[#allocation8 + $0xdc] ss:$12 sps:$4 sm:$0xff]   ;;  %v1702_v45 = vld [vmem:[#allocation8 + $0xd8] ss:$12 sps:$4 sm:$0xff]  }
  0x59   :  { %v1709_v46 = vld [vmem:[#allocation8 + $0xf4] ss:$12 sps:$4 sm:$0xff]   ;;  %v1707_v47 = vld [vmem:[#allocation8 + $0xf0] ss:$12 sps:$4 sm:$0xff]   ;;  %v1714_v48 = vld [vmem:[#allocation8 + $0x10c] ss:$12 sps:$4 sm:$0xff]  }
  0x5a   :  { %928 = vmatpush1.bf16.msra.mxu0 %v1676_v17  ;;  %v1712_v49 = vld [vmem:[#allocation8 + $0x108] ss:$12 sps:$4 sm:$0xff]   ;;  %v1719_v50 = vld [vmem:[#allocation8 + $0x124] ss:$12 sps:$4 sm:$0xff]   ;;  %v1717_v51 = vld [vmem:[#allocation8 + $0x120] ss:$12 sps:$4 sm:$0xff]  }
  0x5b   :  { %929 = vmatprep.subr.bf16.mxu0 %v1681_v18  ;;  %1546 = vmatpush3.bf16.msra.mxu1 %v1706_v26  ;;  %v1724_v52 = vld [vmem:[#allocation8 + $0x13c] ss:$12 sps:$4 sm:$0xff]   ;;  %v1722_v53 = vld [vmem:[#allocation8 + $0x138] ss:$12 sps:$4 sm:$0xff]   ;;  %v1729_v54 = vld [vmem:[#allocation8 + $0x154] ss:$12 sps:$4 sm:$0xff]  }
  0x5c   :  { %1547 = vmatprep.subr.bf16.mxu1 %v1710_v29  ;;  %v1730_v55 = vld [vmem:[#allocation8 + $0x158] ss:$12 sps:$4 sm:$0xff]   ;;  %v1727_v56 = vld [vmem:[#allocation8 + $0x150] ss:$12 sps:$4 sm:$0xff]   ;;  %v1732_v60 = vld [vmem:[#allocation8 + $0x168] ss:$12 sps:$4 sm:$0xff]  }
  0x5d   :  { %v1731_v57 = vld [vmem:[#allocation8 + $0x98] ss:$12 sps:$4 sm:$0xff]   ;;  %v1735_v59 = vld [vmem:[#allocation8 + $0x170] ss:$12 sps:$4 sm:$0xff]   ;;  %v1740_v63 = vld [vmem:[#allocation8 + $0x248] ss:$12 sps:$4 sm:$0xff]  }
  0x5e   :  { %930 = vmatpush1.bf16.msra.mxu0 %v1679_v19  ;;  %v1734_v58 = vld [vmem:[#allocation8 + $0x16c] ss:$12 sps:$4 sm:$0xff]   ;;  %v1736_v61 = vld [vmem:[#allocation8 + $0xb0] ss:$12 sps:$4 sm:$0xff]   ;;  %v2066_v1 = vshrl.u32 %v98_v0, 7  ;;  %s1395_s17 = sshll.u32 %s1960_s16, 4  ;;  %s1396_s17 = int_to_ptr.vmem [resolvable:$true] %s1395_s17 }
  0x5f   :  { %931 = vmatprep.subr.bf16.mxu0 %v1684_v20  ;;  %1548 = vmatpush3.bf16.msra.mxu1 %v1711_v30  ;;  %v1739_v62 = vld [vmem:[#allocation8 + $0x184] ss:$12 sps:$4 sm:$0xff]   ;;  %v96_v3 = vld [vmem:[%s2124_s3] sm:$0xf]  ;;  %p1922_p5 = scmp.lt.s32.totalorder %s1396_s17, %s1396_s17 }
  0x60   :  { %1549 = vmatprep.subr.bf16.mxu1 %v1715_v33  ;;  %v100_v2 = vsub.s32 0, %v2066_v1  ;;  %v104_v4 = vsub.s32 1, %v2066_v1  ;;  %v108_v5 = vsub.s32 2, %v2066_v1  ;;  %v112_v7 = vsub.s32 3, %v2066_v1  ;;  %v1771_v0 = vld [vmem:[#allocation8 + $0x218] ss:$12 sps:$4 sm:$0xff]  }
  0x61   :  { %v1818_v1 = vld [vmem:[#allocation9 + $0x88] sm:$0xff]  }
  0x62   :  { %932 = vmatpush1.bf16.msra.mxu0 %v1682_v23  ;;  %v101_v6 = vrot.slane %v96_v3, %v100_v2  ;;  %v105_v8 = vrot.slane %v96_v3, %v104_v4  ;;  %v109_v10 = vrot.slane %v96_v3, %v108_v5  ;;  %v113_v13 = vrot.slane %v96_v3, %v112_v7  ;;  %v1774_v3 = vld [vmem:[#allocation8 + $0x22c] ss:$12 sps:$4 sm:$0xff]   ;;  %v1772_v7 = vld [vmem:[#allocation8 + $0x228] ss:$12 sps:$4 sm:$0xff]  }
  0x63   :  { %933 = vmatprep.subr.bf16.mxu0 %v1687_v24  ;;  %1550 = vmatpush3.bf16.msra.mxu1 %v1716_v34 }
  0x64   :  { %1551 = vmatprep.subr.bf16.mxu1 %v1720_v35  ;;  %v1737_v35 = vld [vmem:[#allocation8 + $0x180] ss:$12 sps:$4 sm:$0xff]  }
  0x66   :  { %934 = vmatpush1.bf16.msra.mxu0 %v1685_v27 }
  0x67   :  { %935 = vmatprep.subr.bf16.mxu0 %v1690_v28  ;;  %1552 = vmatpush3.bf16.msra.mxu1 %v1721_v38  ;;  %v1744_v38 = vld [vmem:[#allocation8 + $0x19c] ss:$12 sps:$4 sm:$0xff]  }
  0x68   :  { %1553 = vmatprep.subr.bf16.mxu1 %v1725_v40 }
  0x6a   :  { %936 = vmatpush1.bf16.msra.mxu0 %v1688_v31 }
  0x6b   :  { %937 = vmatprep.subr.bf16.mxu0 %v1693_v32  ;;  %1554 = vmatpush3.bf16.msra.mxu1 %v1726_v42 }
  0x6c   :  { %1555 = vmatprep.subr.bf16.mxu1 %v1730_v55  ;;  %v1757_v55 = vld [vmem:[#allocation8 + $0x1e0] ss:$12 sps:$4 sm:$0xff]  }
  0x6e   :  { %938 = vmatpush1.bf16.msra.mxu0 %v1691_v36  ;;  %v1741_v36 = vld [vmem:[#allocation8 + $0x188] ss:$12 sps:$4 sm:$0xff]  }
  0x6f   :  { %939 = vmatprep.subr.bf16.mxu0 %v1696_v37  ;;  %1556 = vmatpush3.bf16.msra.mxu1 %v1731_v57  ;;  %v1764_v57 = vld [vmem:[#allocation8 + $0x1fc] ss:$12 sps:$4 sm:$0xff]  }
  0x70   :  { %1557 = vmatprep.subr.bf16.mxu1 %v1735_v59  ;;  %v1762_v59 = vld [vmem:[#allocation8 + $0x1f8] ss:$12 sps:$4 sm:$0xff]  }
  0x72   :  { %940 = vmatpush1.bf16.msra.mxu0 %v1694_v39  ;;  %v1745_v39 = vld [vmem:[#allocation8 + $0x260] ss:$12 sps:$4 sm:$0xff]  }
  0x73   :  { %941 = vmatprep.subr.bf16.mxu0 %v1699_v41  ;;  %1558 = vmatpush3.bf16.msra.mxu1 %v1736_v61  ;;  %v1769_v61 = vld [vmem:[#allocation8 + $0x214] ss:$12 sps:$4 sm:$0xff]  }
  0x74   :  { %1565 = vmatprep.subr.bf16.mxu1 %v1740_v63  ;;  %v1767_v63 = vld [vmem:[#allocation8 + $0x210] ss:$12 sps:$4 sm:$0xff]  }
  0x76   :  { %942 = vmatpush1.bf16.msra.mxu0 %v1697_v43  ;;  %v1742_v43 = vld [vmem:[#allocation8 + $0x198] ss:$12 sps:$4 sm:$0xff]  }
  0x77   :  { %943 = vmatprep.subr.bf16.mxu0 %v1704_v44  ;;  %v1746_v44 = vld [vmem:[#allocation8 + $0x1a0] ss:$12 sps:$4 sm:$0xff]  }
  0x7a   :  { %944 = vmatpush1.bf16.msra.mxu0 %v1702_v45  ;;  %v1749_v45 = vld [vmem:[#allocation8 + $0x1b4] ss:$12 sps:$4 sm:$0xff]  }
  0x7b   :  { %945 = vmatprep.subr.bf16.mxu0 %v1709_v46  ;;  %v1750_v46 = vld [vmem:[#allocation8 + $0x278] ss:$12 sps:$4 sm:$0xff]  }
  0x7e   :  { %946 = vmatpush1.bf16.msra.mxu0 %v1707_v47  ;;  %v1747_v47 = vld [vmem:[#allocation8 + $0x1b0] ss:$12 sps:$4 sm:$0xff]  }
  0x7f   :  { %947 = vmatprep.subr.bf16.mxu0 %v1714_v48  ;;  %v1751_v48 = vld [vmem:[#allocation8 + $0x1b8] ss:$12 sps:$4 sm:$0xff]  }
  0x82   :  { %948 = vmatpush1.bf16.msra.mxu0 %v1712_v49  ;;  %v1754_v49 = vld [vmem:[#allocation8 + $0x1cc] ss:$12 sps:$4 sm:$0xff]  }
  0x83   :  { %949 = vmatprep.subr.bf16.mxu0 %v1719_v50  ;;  %v1755_v50 = vld [vmem:[#allocation8 + $0x290] ss:$12 sps:$4 sm:$0xff]  }
  0x86   :  { %950 = vmatpush1.bf16.msra.mxu0 %v1717_v51  ;;  %v1752_v51 = vld [vmem:[#allocation8 + $0x1c8] ss:$12 sps:$4 sm:$0xff]  }
  0x87   :  { %951 = vmatprep.subr.bf16.mxu0 %v1724_v52  ;;  %v1756_v52 = vld [vmem:[#allocation8 + $0x1d0] ss:$12 sps:$4 sm:$0xff]  }
  0x8a   :  { %952 = vmatpush1.bf16.msra.mxu0 %v1722_v53  ;;  %v1759_v53 = vld [vmem:[#allocation8 + $0x1e4] ss:$12 sps:$4 sm:$0xff]  }
  0x8b   :  { %953 = vmatprep.subr.bf16.mxu0 %v1729_v54  ;;  %v1760_v54 = vld [vmem:[#allocation8 + $0x2a8] ss:$12 sps:$4 sm:$0xff]  }
  0x8e   :  { %954 = vmatpush1.bf16.msra.mxu0 %v1727_v56  ;;  %v1761_v56 = vld [vmem:[#allocation8 + $0x1e8] ss:$12 sps:$4 sm:$0xff]  }
  0x8f   :  { %955 = vmatprep.subr.bf16.mxu0 %v1734_v58  ;;  %v1765_v58 = vld [vmem:[#allocation8 + $0x2c0] ss:$12 sps:$4 sm:$0xff]  }
  0x92   :  { %956 = vmatpush1.bf16.msra.mxu0 %v1732_v60  ;;  %v1766_v60 = vld [vmem:[#allocation8 + $0x200] ss:$12 sps:$4 sm:$0xff]  }
  0x93   :  { %968 = vmatprep.subr.bf16.mxu0 %v1739_v62  ;;  %v1770_v62 = vld [vmem:[#allocation8 + $0x2d8] ss:$12 sps:$4 sm:$0xff]  }
 0x128   :  { %v204_v9 = vpop.f32.mrb[0].mxu0 }
 0x129   :  { %v205_v11 = vadd.f32 %v204_v9, %v101_v6  ;;  %v206_v12 = vpop.f32.mrb[1].mxu0  ;;  %v247_v18 = vpop.f32.mrb[0].mxu1  ;;  %v1779_v9 = vld [vmem:[#allocation8 + $0x244] ss:$12 sps:$4 sm:$0xff]  }
 0x12a   :  { %v207_v14 = vadd.f32 %v206_v12, %v105_v8  ;;  %v208_v15 = vpop.f32.mrb[2].mxu0  ;;  %v248_v20 = vadd.f32 %v247_v18, %v109_v10  ;;  %v249_v21 = vpop.f32.mrb[1].mxu1  ;;  %v1780_v12 = vld [vmem:[#allocation8 + $0x258] ss:$12 sps:$4 sm:$0xff]   ;;  %v1789_v18 = vld [vmem:[#allocation8 + $0x2a0] ss:$12 sps:$4 sm:$0xff]  }
 0x12b   :  { %v209_v16 = vadd.f32 %v208_v15, %v101_v6  ;;  %v210_v17 = vpop.f32.mrb[3].mxu0  ;;  %v256_v22 = vmax.f32 %v205_v11, 0.0  ;;  %v250_v24 = vadd.f32 %v249_v21, %v113_v13  ;;  %v251_v25 = vpop.f32.mrb[2].mxu1  ;;  %v1775_v6 = vld [vmem:[#allocation8 + $0x2f0] ss:$12 sps:$4 sm:$0xff]  }
 0x12c   :  { %v211_v19 = vadd.f32 %v210_v17, %v105_v8  ;;  %v257_v26 = vmax.f32 %v207_v14, 0.0  ;;  %v258_v28 = vmax.f32 %v248_v20, 0.0  ;;  %v252_v29 = vadd.f32 %v251_v25, %v109_v10  ;;  %v253_v30 = vpop.f32.mrb[3].mxu1  ;;  %v1776_v8 = vld [vmem:[#allocation8 + $0x230] ss:$12 sps:$4 sm:$0xff]   ;;  %v1801_v25 = vld [vmem:[#allocation9 + $0x40] sm:$0xff]  }
 0x12d   :  { %v260_v23 = vmax.f32 %v209_v16, 0.0  ;;  %v259_v32 = vmax.f32 %v250_v24, 0.0  ;;  %v254_v33 = vadd.f32 %v253_v30, %v113_v13  ;;  %v1777_v10 = vld [vmem:[#allocation8 + $0x240] ss:$12 sps:$4 sm:$0xff]   ;;  %v1782_v11 = vld [vmem:[#allocation8 + $0x25c] ss:$12 sps:$4 sm:$0xff]  }
 0x12e   :  { %v261_v27 = vmax.f32 %v211_v19, 0.0  ;;  %v262_v37 = vmax.f32 %v252_v29, 0.0  ;;  %v1785_v13 = vld [vmem:[#allocation8 + $0x274] ss:$12 sps:$4 sm:$0xff]   ;;  %v1783_v14 = vld [vmem:[#allocation8 + $0x270] ss:$12 sps:$4 sm:$0xff]  }
 0x12f   :  { %v264_v31 = vpack.c.bf16 %v260_v23, %v256_v22  ;;  %v263_v40 = vmax.f32 %v254_v33, 0.0  ;;  %v1788_v15 = vld [vmem:[#allocation8 + $0x28c] ss:$12 sps:$4 sm:$0xff]   ;;  %v1786_v16 = vld [vmem:[#allocation8 + $0x288] ss:$12 sps:$4 sm:$0xff]   ;;  %v1809_v33 = vld [vmem:[#allocation9 + $0x60] sm:$0xff]  }
 0x130   :  { %v265_v34 = vpack.c.bf16 %v261_v27, %v257_v26  ;;  %v2081_v41 = vpack.c.bf16 %v262_v37, %v258_v28  ;;  %v1791_v17 = vld [vmem:[#allocation8 + $0x2a4] ss:$12 sps:$4 sm:$0xff]   ;;  %v1794_v19 = vld [vmem:[#allocation8 + $0x2bc] ss:$12 sps:$4 sm:$0xff]   ;;  %v1797_v21 = vld [vmem:[#allocation8 + $0x2d4] ss:$12 sps:$4 sm:$0xff]  }
 0x131   :  { %v267_v42 = vpack.c.bf16 %v263_v40, %v259_v32  ;;  %v1792_v20 = vld [vmem:[#allocation8 + $0x2b8] ss:$12 sps:$4 sm:$0xff]   ;;  %v1795_v22 = vld [vmem:[#allocation8 + $0x2d0] ss:$12 sps:$4 sm:$0xff]   ;;  %v1798_v24 = vld [vmem:[#allocation8 + $0x2e8] ss:$12 sps:$4 sm:$0xff]  }
 0x132   :  { %957 = vmatprep.mubr.bf16.mxu0 %v265_v34  ;;  %1043 = vmatprep.mubr.bf16.mxu1 %v265_v34  ;;  %v1800_v23 = vld [vmem:[#allocation8 + $0x2ec] ss:$12 sps:$4 sm:$0xff]   ;;  %v1802_v26 = vld [vmem:[#allocation9] sm:$0xff]   ;;  %v1805_v29 = vld [vmem:[#allocation9 + $0x50] sm:$0xff]  }
 0x133   :  { %958 = vmatmul.mubr.bf16.vlgmr.msra.gmra.mrb[4].mxu0 %v264_v31  ;;  %1044 = vmatmul.mubr.bf16.vlgmr.msra.gmra.mrb[4].mxu1 %v264_v31  ;;  %v1803_v27 = vld [vmem:[#allocation9 + $0x48] sm:$0xff]   ;;  %v1806_v30 = vld [vmem:[#allocation9 + $0x10] sm:$0xff]   ;;  %v1807_v31 = vld [vmem:[#allocation9 + $0x58] sm:$0xff]  }
 0x134   :  { %969 = vmatpush1.bf16.msra.mxu0 %v1737_v35  ;;  %1566 = vmatpush3.bf16.msra.mxu1 %v1741_v36  ;;  %v1804_v28 = vld [vmem:[#allocation9 + $0x8] sm:$0xff]   ;;  %v1808_v32 = vld [vmem:[#allocation9 + $0x18] sm:$0xff]   ;;  %v1810_v34 = vld [vmem:[#allocation9 + $0x20] sm:$0xff]  }
 0x135   :  { %970 = vmatprep.subr.bf16.mxu0 %v1744_v38  ;;  %1567 = vmatprep.subr.bf16.mxu1 %v1745_v39  ;;  %v1811_v35 = vld [vmem:[#allocation9 + $0x68] sm:$0xff]   ;;  %v1813_v37 = vld [vmem:[#allocation9 + $0x70] sm:$0xff]   ;;  %v1815_v39 = vld [vmem:[#allocation9 + $0x78] sm:$0xff]  }
 0x136   :  { %1084 = vmatprep.mubr.bf16.mxu1 %v267_v42  ;;  %1000 = vmatprep.mubr.bf16.mxu0 %v267_v42  ;;  %v1812_v36 = vld [vmem:[#allocation9 + $0x28] sm:$0xff]   ;;  %v1814_v38 = vld [vmem:[#allocation9 + $0x30] sm:$0xff]   ;;  %v1816_v40 = vld [vmem:[#allocation9 + $0x38] sm:$0xff]  }
 0x138   :  { %971 = vmatpush1.bf16.msra.mxu0 %v1742_v43  ;;  %1568 = vmatpush3.bf16.msra.mxu1 %v1746_v44 }
 0x139   :  { %972 = vmatprep.subr.bf16.mxu0 %v1749_v45  ;;  %1569 = vmatprep.subr.bf16.mxu1 %v1750_v46 }
 0x13c   :  { %973 = vmatpush1.bf16.msra.mxu0 %v1747_v47  ;;  %1570 = vmatpush3.bf16.msra.mxu1 %v1751_v48  ;;  %v396_v48 = vld [vmem:[%s2126_s5] sm:$0x7] }
 0x13d   :  { %974 = vmatprep.subr.bf16.mxu0 %v1754_v49  ;;  %1571 = vmatprep.subr.bf16.mxu1 %v1755_v50  ;;  %v409_v49 = vrot.slane %v396_v48, %v108_v5 }
 0x140   :  { %975 = vmatpush1.bf16.msra.mxu0 %v1752_v51  ;;  %1572 = vmatpush3.bf16.msra.mxu1 %v1756_v52 }
 0x141   :  { %976 = vmatprep.subr.bf16.mxu0 %v1759_v53  ;;  %1573 = vmatprep.subr.bf16.mxu1 %v1760_v54 }
 0x144   :  { %977 = vmatpush1.bf16.msra.mxu0 %v1757_v55  ;;  %1574 = vmatpush3.bf16.msra.mxu1 %v1761_v56 }
 0x145   :  { %978 = vmatprep.subr.bf16.mxu0 %v1764_v57  ;;  %1575 = vmatprep.subr.bf16.mxu1 %v1765_v58 }
 0x148   :  { %979 = vmatpush1.bf16.msra.mxu0 %v1762_v59  ;;  %1576 = vmatpush3.bf16.msra.mxu1 %v1766_v60 }
 0x149   :  { %980 = vmatprep.subr.bf16.mxu0 %v1769_v61  ;;  %1577 = vmatprep.subr.bf16.mxu1 %v1770_v62 }
 0x14c   :  { %981 = vmatpush1.bf16.msra.mxu0 %v1767_v63  ;;  %1578 = vmatpush3.bf16.msra.mxu1 %v1771_v0  ;;  %v401_v63 = vrot.slane %v396_v48, %v100_v2  ;;  %v405_v0 = vrot.slane %v396_v48, %v104_v4  ;;  %v1819_v2 = vld [vmem:[#allocation9 + $0x90] sm:$0xff]   ;;  %v1820_v4 = vld [vmem:[#allocation9 + $0x98] sm:$0xff]  }
 0x14d   :  { %982 = vmatprep.subr.bf16.mxu0 %v1774_v3  ;;  %1579 = vmatprep.subr.bf16.mxu1 %v1775_v6 }
 0x150   :  { %983 = vmatpush1.bf16.msra.mxu0 %v1772_v7  ;;  %1580 = vmatpush3.bf16.msra.mxu1 %v1776_v8 }
 0x151   :  { %984 = vmatprep.subr.bf16.mxu0 %v1779_v9  ;;  %1587 = vmatprep.subr.bf16.mxu1 %v1801_v25 }
 0x153   :  { %1085 = vmatmul.mubr.bf16.vlgmr.msra.gmra.mrb[8].mxu1 %v2081_v41 }
 0x154   :  { %985 = vmatpush1.bf16.msra.mxu0 %v1777_v10  ;;  %1588 = vmatpush3.bf16.msra.mxu1 %v1802_v26 }
 0x155   :  { %986 = vmatprep.subr.bf16.mxu0 %v1782_v11  ;;  %1589 = vmatprep.subr.bf16.mxu1 %v1803_v27 }
 0x158   :  { %987 = vmatpush1.bf16.msra.mxu0 %v1780_v12  ;;  %1590 = vmatpush3.bf16.msra.mxu1 %v1804_v28 }
 0x159   :  { %988 = vmatprep.subr.bf16.mxu0 %v1785_v13  ;;  %1591 = vmatprep.subr.bf16.mxu1 %v1805_v29  ;;  %v1518_v29 = vld [vmem:[%s2128_s7] ss:$0 sm:$0xff]  ;;  %s1917_s7 = scalar_lea.vmem %s1396_s17, 256 }
 0x15a   :  { %p1918_p4 = scmp.ne.s32.totalorder %s1396_s17, %s1917_s7  ;;  %p1923_p6 = scmp.lt.s32.totalorder %s1917_s7, %s1917_s7 }
 0x15c   :  { %989 = vmatpush1.bf16.msra.mxu0 %v1783_v14  ;;  %1592 = vmatpush3.bf16.msra.mxu1 %v1806_v30  ;;  %p1924_p7 = por %p1923_p6, %p1922_p5 }
 0x15d   :  { %990 = vmatprep.subr.bf16.mxu0 %v1788_v15  ;;  %1593 = vmatprep.subr.bf16.mxu1 %v1807_v31 }
 0x15e   :  { %p1925_p8 = pnand %p1924_p7, %p1918_p4 }
 0x160   :  { %991 = vmatpush1.bf16.msra.mxu0 %v1786_v16  ;;  %1594 = vmatpush3.bf16.msra.mxu1 %v1808_v32 }
 0x161   :  { %992 = vmatprep.subr.bf16.mxu0 %v1791_v17  ;;  %1595 = vmatprep.subr.bf16.mxu1 %v1809_v33 }
 0x164   :  { %993 = vmatpush1.bf16.msra.mxu0 %v1789_v18  ;;  %1596 = vmatpush3.bf16.msra.mxu1 %v1810_v34  ;;  %v1817_v18 = vld [vmem:[#allocation9 + $0x80] sm:$0xff]  }
 0x165   :  { %994 = vmatprep.subr.bf16.mxu0 %v1794_v19  ;;  %1597 = vmatprep.subr.bf16.mxu1 %v1811_v35  ;;  %v1821_v19 = vld [vmem:[#allocation9 + $0xa0] sm:$0xff]  }
 0x168   :  { %995 = vmatpush1.bf16.msra.mxu0 %v1792_v20  ;;  %1598 = vmatpush3.bf16.msra.mxu1 %v1812_v36  ;;  %v1822_v20 = vld [vmem:[#allocation9 + $0xa8] sm:$0xff]  }
 0x169   :  { %996 = vmatprep.subr.bf16.mxu0 %v1797_v21  ;;  %1599 = vmatprep.subr.bf16.mxu1 %v1813_v37  ;;  %v1823_v21 = vld [vmem:[#allocation9 + $0xb0] sm:$0xff]  }
 0x16c   :  { %997 = vmatpush1.bf16.msra.mxu0 %v1795_v22  ;;  %1600 = vmatpush3.bf16.msra.mxu1 %v1814_v38  ;;  %v1824_v22 = vld [vmem:[#allocation9 + $0xb8] sm:$0xff]   ;;  %v1385_v38 = vstv %s2121_s0 }
 0x16d   :  { %998 = vmatprep.subr.bf16.mxu0 %v1800_v23  ;;  %1601 = vmatprep.subr.bf16.mxu1 %v1815_v39 }
 0x170   :  { %999 = vmatpush1.bf16.msra.mxu0 %v1798_v24  ;;  %1602 = vmatpush3.bf16.msra.mxu1 %v1816_v40 }
 0x173   :  { %1001 = vmatmul.mubr.bf16.vlgmr.msra.gmra.mrb[4].mxu0 %v2081_v41  ;;  %v1958_v41 = vmov 0.0  }
 0x174   :  { %1618 = vmatprep.subr.bf16.mxu1 %v1958_v41 }
 0x206   :  { %v1559_v42 = vpop.f32.mrb[4].mxu1 }
 0x207   :  { %v1560_v43 = vpop.f32.mrb[5].mxu1 }
 0x208   :  { %v1561_v44 = vadd.f32 %v1560_v43, %v1559_v42  ;;  %v1562_v45 = vpop.f32.mrb[6].mxu1 }
 0x209   :  { %v1563_v46 = vpop.f32.mrb[7].mxu1 }
 0x20a   :  { %v1564_v47 = vadd.f32 %v1563_v46, %v1562_v45  ;;  %v1046_v52 = vadd.f32 %v1561_v44, %v409_v49 }
 0x20c   :  { %v1049_v56 = vadd.f32 %v1564_v47, %v409_v49 }
 0x226   :  { %v1581_v50 = vpop.f32.mrb[8].mxu1 }
 0x227   :  { %v1582_v51 = vpop.f32.mrb[9].mxu1 }
 0x228   :  { %v1583_v53 = vadd.f32 %v1582_v51, %v1581_v50  ;;  %v1584_v54 = vpop.f32.mrb[10].mxu1 }
 0x229   :  { %v1585_v55 = vpop.f32.mrb[11].mxu1 }
 0x22a   :  { %v1087_v57 = vadd.f32 %v1583_v53, %v1046_v52  ;;  %v1586_v58 = vadd.f32 %v1585_v55, %v1584_v54 }
 0x22c   :  { %v1090_v59 = vadd.f32 %v1586_v58, %v1049_v56  ;;  %v1095_v60 = vmax.f32 %v1087_v57, 0.0 }
 0x22e   :  { %v1098_v61 = vmax.f32 %v1090_v59, 0.0 }
 0x230   :  { %v1101_v62 = vpack.c.bf16 %v1098_v61, %v1095_v60 }
 0x246   :  { %v1002_v5 = vpop.f32.mrb[4].mxu0 }
 0x247   :  { %v1638_v3 = vadd.f32 %v1002_v5, %v401_v63  ;;  %v1004_v6 = vpop.f32.mrb[5].mxu0 }
 0x248   :  { %v1639_v7 = vadd.f32 %v1004_v6, %v405_v0  ;;  %v1006_v8 = vpop.f32.mrb[6].mxu0 }
 0x249   :  { %v1640_v9 = vadd.f32 %v1006_v8, %v401_v63  ;;  %v1008_v10 = vpop.f32.mrb[7].mxu0  ;;  %v1093_v12 = vmax.f32 %v1638_v3, 0.0 }
 0x24a   :  { %v1641_v11 = vadd.f32 %v1008_v10, %v405_v0  ;;  %v1094_v14 = vmax.f32 %v1639_v7, 0.0 }
 0x24b   :  { %v1096_v13 = vmax.f32 %v1640_v9, 0.0 }
 0x24c   :  { %v1097_v15 = vmax.f32 %v1641_v11, 0.0 }
 0x24d   :  { %v1099_v16 = vpack.c.bf16 %v1096_v13, %v1093_v12 }
 0x24e   :  { %v1100_v17 = vpack.c.bf16 %v1097_v15, %v1094_v14 }
 0x250   :  { %1333 = vmatprep.mubr.bf16.mxu1 %v1100_v17 }
 0x251   :  { %1334 = vmatmul.mubr.bf16.vlgmr.msra.gmra.mrb[12].mxu1 %v1099_v16 }
 0x252   :  { %1619 = vmatpush3.bf16.msra.mxu1 %v1817_v18  ;;  %1634 = vmatprep.mubr.msk.bf16.mxu1 %vm1959_vm2, %v1958_v41 }
 0x253   :  { %1620 = vmatprep.subr.bf16.mxu1 %v1958_v41 }
 0x256   :  { %1621 = vmatpush3.bf16.msra.mxu1 %v1818_v1 }
 0x257   :  { %1622 = vmatprep.subr.bf16.mxu1 %v1958_v41 }
 0x25a   :  { %1623 = vmatpush3.bf16.msra.mxu1 %v1819_v2 }
 0x25b   :  { %1624 = vmatprep.subr.bf16.mxu1 %v1958_v41 }
 0x25e   :  { %1625 = vmatpush3.bf16.msra.mxu1 %v1820_v4 }
 0x25f   :  { %1626 = vmatprep.subr.bf16.mxu1 %v1958_v41 }
 0x262   :  { %1627 = vmatpush3.bf16.msra.mxu1 %v1821_v19 }
 0x263   :  { %1628 = vmatprep.subr.bf16.mxu1 %v1958_v41 }
 0x266   :  { %1629 = vmatpush3.bf16.msra.mxu1 %v1822_v20 }
 0x267   :  { %1630 = vmatprep.subr.bf16.mxu1 %v1958_v41 }
 0x26a   :  { %1631 = vmatpush3.bf16.msra.mxu1 %v1823_v21 }
 0x26b   :  { %1632 = vmatprep.subr.bf16.mxu1 %v1958_v41 }
 0x26e   :  { %1633 = vmatpush3.bf16.msra.mxu1 %v1824_v22 }
 0x271   :  { %1635 = vmatmul.mubr.bf16.vlgmr.msra.gmra.mrb[16].mxu1 %v1101_v62 }
 0x324   :  { %v1603_v23 = vpop.f32.mrb[12].mxu1 }
 0x325   :  { %v1604_v24 = vpop.f32.mrb[13].mxu1 }
 0x326   :  { %v1605_v25 = vadd.f32 %v1604_v24, %v1603_v23  ;;  %v1606_v26 = vpop.f32.mrb[14].mxu1 }
 0x327   :  { %v1607_v27 = vpop.f32.mrb[15].mxu1 }
 0x328   :  { %v1608_v28 = vadd.f32 %v1607_v27, %v1606_v26  ;;  %v1336_v30 = vadd.f32 %v1605_v25, %v1518_v29 }
 0x32a   :  { %v1339_v34 = vadd.f32 %v1608_v28, %v1518_v29 }
 0x344   :  { %v1376_v31 = vpop.f32.mrb[16].mxu1 }
 0x345   :  { %v1377_v32 = vadd.f32 %v1376_v31, %v1336_v30  ;;  %v1636_v33 = vpop.f32.mrb[17].mxu1 }
 0x346   :  { %v1379_v35 = vpop.f32.mrb[18].mxu1 }
 0x347   :  { %1825 = vtanh.f32 %v1377_v32  ;;  %v1380_v36 = vadd.f32 %v1379_v35, %v1339_v34  ;;  %v1637_v37 = vpop.f32.mrb[19].mxu1 }
 0x349   :  { %1827 = vtanh.f32 %v1380_v36 }
 0x351   :  { %v1826_v39 = vpop.eup %1825 }
 0x352   :  { %v1386_v40 = vmul.f32 %v1826_v39, %v1385_v38 }
 0x353   :  { %v1828_v41 = vpop.eup %1827 }
 0x354   :  { %v1387_v42 = vmul.f32 %v1828_v41, %v1385_v38  ;;  %1388 = vst [vmem:[#allocation11] sm:$0xff] %v1386_v40 }
 0x356   :  { %1389 = vst [vmem:[#allocation11 + $0x8] sm:$0xff] %v1387_v42 }
 0x357   :  { %1928 = shalt.err (!%p1925_p8)
}
 0x358   :  { %s1929_s0 = scalar_lea.hbm %s2129_s8, 256 }
 0x359   :  { %p1930_p9 = scmp.ne.s32.totalorder %s2129_s8, %s1929_s0  ;;  %p1933_p10 = scmp.lt.u32.totalorder %s1929_s0, %s2129_s8 }
 0x35b   :  { %p1935_p11 = pnand %p1933_p10, %p1930_p9 }
 0x35d   :  { %1938 = shalt.err (!%p1935_p11)
}
 0x35e   :  { %s1961_s23 = smov 128   ;;  %s1962_s24 = smov 8  }
 0x35f   :  { %1401 = dma.vmem_to_hbm [thread:$0]  %s1396_s17, 256, %s2129_s8, [#allocation5], %s1961_s23, %s1961_s23, %s1962_s24  }
 0x360   :  { %1945 = dma.done.wait [#allocation5], 256  }
 0x361   :  { %1946 = vsyncadd [#allocation5], 4294967040 }
 0x362   :  { %1405 = vsyncpa [#allocation4], 1 }
 0x363   :  { %1406 = vsyncpa [#allocation7], 1 }
 0x364   :  { %1407 = vsyncpa [#allocation10], 1 }
 0x365   :  { %1408 = vsyncpa [#allocation5], 1 }

</bundles_post_ra>
